<compile_context>
chip_gen: v7x
topology: tpu7x:2x2x1
jax: 0.10.0
libtpu: 0.0.40
codegen_flags: <defaults>
</compile_context>

<pallas_src>
import functools

import numpy as np
import jax
import jax.numpy as jnp
from jax.experimental import pallas as pl
from jax.experimental.pallas import tpu as pltpu

# ---------------- configuration ------------------------------------------------
INPUT_DIM = 2
CONDITION_DIM = 5
NUM_CONTROL_POINTS = 8
SPLINE_HIDDEN = 128          # lane-dense; module default 256 (fine on v6e/v7x)
DIFF_HIDDEN = 128            # lane-dense; module default 256 (fine on v6e/v7x)
TIME_EMB_DIM = 32
NUM_DIFFUSION_STEPS = 100
MOVING_AVG_WINDOW = 10
PARTIAL_W = 128              # lane-dense width of the per-batch partial rows
VMEM_LIMIT_BYTES = 32 * 1024 * 1024


# ---------------- helpers: structural matrices (host side, built once) ---------
def _moving_average_matrix(T, window):
  """A[t, s] such that low[t] = sum_s A[t, s] * x[s] (edge-clamped window)."""
  left = (window - 1) // 2
  A = np.zeros((T, T), np.float32)
  for t in range(T):
    for k in range(t - left, t - left + window):
      A[t, min(max(k, 0), T - 1)] += 1.0 / window
  return A


def _second_diff_matrix(T):
  """D2[j, s]: acc[j] = x[j] - 2 x[j+1] + x[j+2]  (j = 0..T-3)."""
  D2 = np.zeros((T - 2, T), np.float32)
  for j in range(T - 2):
    D2[j, j] = 1.0
    D2[j, j + 1] = -2.0
    D2[j, j + 2] = 1.0
  return D2


def _interp_matrix(T, P):
  """(T, P) linear-interpolation matrix: control points -> sequence."""
  t = np.linspace(0.0, 1.0, T)
  u = t * (P - 1)
  lo = np.clip(np.floor(u).astype(np.int64), 0, P - 2)
  frac = (u - lo).astype(np.float32)
  M = np.zeros((T, P), np.float32)
  rows = np.arange(T)
  M[rows, lo] = 1.0 - frac
  M[rows, lo + 1] += frac
  return M


def _cosine_alpha_bars(num_steps, s=0.008):
  steps = np.arange(num_steps + 1, dtype=np.float64)
  f = np.cos(((steps / num_steps) + s) / (1.0 + s) * (np.pi / 2.0)) ** 2
  ab = f / f[0]
  betas = np.clip(1.0 - ab[1:] / ab[:-1], 0.0, 0.999)
  return jnp.asarray(np.cumprod(1.0 - betas), jnp.float32)


def _sinusoidal_time_embedding(t, dim):
  half = dim // 2
  freqs = jnp.exp(-jnp.log(10000.0) *
                  jnp.arange(half, dtype=jnp.float32) / half)
  args = t.astype(jnp.float32)[:, None] * freqs[None, :]
  return jnp.concatenate([jnp.sin(args), jnp.cos(args)], axis=-1)


def _partial_row(values):
  """Pack a few traced scalars into one lane-dense (1, PARTIAL_W) f32 row."""
  lane = jax.lax.broadcasted_iota(jnp.int32, (1, PARTIAL_W), 1)
  row = jnp.zeros((1, PARTIAL_W), jnp.float32)
  for i, v in enumerate(values):
    row = jnp.where(lane == i, v, row)
  return row


# ---------------- kernel 1: decompose + spline + partial losses ---------------
def _decompose_spline_kernel(
    x_ref, cond_ref, avg_ref, d2_ref,
    sp_w1_ref, sp_b1_ref, sp_w2_ref, sp_b2_ref, w_eff_ref, b_eff_ref,
    lp_ref, high_ref, part_ref, *, D, T):
  f32 = jnp.float32
  bf16 = jnp.bfloat16

  # moving-average decomposition on the MXU: low = x @ A^T   (one (D,T) slab)
  x_dt = x_ref[0]                                                 # (D, T)
  low_dt = jnp.dot(x_dt, avg_ref[...], preferred_element_type=f32)
  high_dt = x_dt - low_dt
  high_ref[0] = high_dt                                           # lane-dense

  # condition -> spline hidden (per-batch row; M=1 rows, lane-dense K/N)
  cond_b = cond_ref[0]                                            # (1, C)
  h = jnp.dot(cond_b.astype(bf16), sp_w1_ref[...], preferred_element_type=f32)
  h = jnp.maximum(h + sp_b1_ref[...], 0.0)
  h = jnp.dot(h.astype(bf16), sp_w2_ref[...], preferred_element_type=f32)
  h = jnp.maximum(h + sp_b2_ref[...], 0.0)                        # (1, H)
  h_bf = h.astype(bf16)

  # spline prediction per channel (interp matrix pre-folded into w_eff)
  lp_rows = []
  for d in range(D):                                              # static, D=2
    lp_d = jnp.dot(h_bf, w_eff_ref[d], preferred_element_type=f32)
    lp_rows.append(lp_d + b_eff_ref[d])                           # (1, T)
  lp_dt = jnp.concatenate(lp_rows, axis=0)                        # (D, T)
  lp_ref[0] = lp_dt                                               # lane-dense

  # per-batch partial reductions (combined in the wrapper)
  diff = lp_dt - low_dt
  low_sq = jnp.sum(diff * diff)                                   # MSE numerator
  acc = jnp.dot(lp_dt, d2_ref[...], preferred_element_type=f32)   # (D, T-2)
  low_sm = jnp.sum(acc * acc)                                     # smooth numer.
  s_high = jnp.sum(high_dt)
  ss_high = jnp.sum(high_dt * high_dt)
  part_ref[0] = _partial_row([low_sq, low_sm, s_high, ss_high])


# ---------------- kernel 2: normalize + add noise + diffusion MLP -------------
def _diffusion_kernel(
    high_ref, noise_ref, cond_ref, temb_ref, stats_ref, ab_ref, d2_ref,
    df_wx_ref, df_wt_ref, df_wc_ref, df_b1_ref,
    df_w2_ref, df_b2_ref, df_w3_ref, df_b3_ref, df_w4_ref, df_b4_ref,
    pred_ref, part_ref, *, D, T):
  f32 = jnp.float32
  bf16 = jnp.bfloat16
  b = pl.program_id(0)

  mean = stats_ref[0, 0]                                          # scalar (SMEM)
  inv_std = stats_ref[0, 1]                                       # 1/(std+1e-6)
  sa = ab_ref[b, 0]                                               # sqrt(ab_t)
  sb = ab_ref[b, 1]                                               # sqrt(1-ab_t)

  high_dt = high_ref[0]                                           # (D, T)
  noise_dt = noise_ref[0]                                         # (D, T)
  # normalize with the global batch stats, then forward diffusion add-noise
  xn_dt = (high_dt - mean) * (inv_std * sa) + noise_dt * sb       # (D, T)
  xn_td = jnp.transpose(xn_dt)                                    # (T, D) rows

  # per-batch conditioning row of the first layer (broadcasts over T rows)
  cond_b = cond_ref[0]                                            # (1, C)
  temb_b = temb_ref[0]                                            # (1, TE)
  pre = jnp.dot(temb_b.astype(bf16), df_wt_ref[...], preferred_element_type=f32)
  pre = pre + jnp.dot(cond_b.astype(bf16), df_wc_ref[...],
                      preferred_element_type=f32)
  pre = pre + df_b1_ref[...]                                      # (1, DH)

  # x contribution: K == D == 2 -> VPU broadcast-FMAs instead of an MXU pass
  wx = df_wx_ref[...]                                             # (D, DH) f32
  h1 = pre
  for d in range(D):                                              # static, D=2
    h1 = h1 + xn_td[:, d:d + 1] * wx[d:d + 1, :]                  # (T, DH)
  h1 = jnp.maximum(h1, 0.0)

  # remaining diffusion MLP layers (lane-dense hidden = 128)
  h2 = jnp.dot(h1.astype(bf16), df_w2_ref[...], preferred_element_type=f32)
  h2 = jnp.maximum(h2 + df_b2_ref[...], 0.0)
  h3 = jnp.dot(h2.astype(bf16), df_w3_ref[...], preferred_element_type=f32)
  h3 = jnp.maximum(h3 + df_b3_ref[...], 0.0)
  pred_td = jnp.dot(h3.astype(bf16), df_w4_ref[...], preferred_element_type=f32)
  pred_td = pred_td + df_b4_ref[...]                              # (T, D)

  pred_dt = jnp.transpose(pred_td)                                # (D, T)
  pred_ref[0] = pred_dt                                           # lane-dense

  dn = pred_dt - noise_dt
  hi_sq = jnp.sum(dn * dn)
  acc = jnp.dot(pred_dt, d2_ref[...], preferred_element_type=f32)  # (D, T-2)
  hi_sm = jnp.sum(acc * acc)
  part_ref[0] = _partial_row([hi_sq, hi_sm])


# ---------------- parameters ----------------------------------------------------
def init_params(key, seq_len):
  T = seq_len
  D, C, H, DH = INPUT_DIM, CONDITION_DIM, SPLINE_HIDDEN, DIFF_HIDDEN
  P, TE = NUM_CONTROL_POINTS, TIME_EMB_DIM
  assert T >= 3, "smoothness loss requires seq_len >= 3"

  keys = jax.random.split(key, 7)

  def dense(k, fin, fout):
    w = 0.02 * jax.random.normal(k, (fin, fout), jnp.float32)
    b = jnp.zeros((fout,), jnp.float32)
    return w, b

  sp_w1, sp_b1 = dense(keys[0], C, H)
  sp_w2, sp_b2 = dense(keys[1], H, H)
  sp_w3, sp_b3 = dense(keys[2], H, P * D)
  df_w1, df_b1 = dense(keys[3], D + TE + C, DH)
  df_w2, df_b2 = dense(keys[4], DH, DH)
  df_w3, df_b3 = dense(keys[5], DH, DH)
  df_w4, df_b4 = dense(keys[6], DH, D)

  # fold the spline interpolation matrix into the last spline layer
  interp = jnp.asarray(_interp_matrix(T, P))                      # (T, P)
  w3r = sp_w3.reshape(H, P, D)
  w_eff = jnp.einsum('hpd,tp->dht', w3r, interp)                  # (D, H, T)
  b_eff = jnp.einsum('tp,pd->dt', interp,
                     sp_b3.reshape(P, D)).reshape(D, 1, T)

  A = _moving_average_matrix(T, MOVING_AVG_WINDOW)                # (T, T)
  D2 = _second_diff_matrix(T)                                     # (T-2, T)

  return {
      # learned weights bf16 (f32 accumulate), biases f32
      "sp_w1": sp_w1.astype(jnp.bfloat16), "sp_b1": sp_b1.reshape(1, H),
      "sp_w2": sp_w2.astype(jnp.bfloat16), "sp_b2": sp_b2.reshape(1, H),
      "w_eff": w_eff.astype(jnp.bfloat16), "b_eff": b_eff.astype(jnp.float32),
      "df_wx": df_w1[:D],                                         # f32 (VPU path)
      "df_wt": df_w1[D:D + TE].astype(jnp.bfloat16),
      "df_wc": df_w1[D + TE:].astype(jnp.bfloat16),
      "df_b1": df_b1.reshape(1, DH),
      "df_w2": df_w2.astype(jnp.bfloat16), "df_b2": df_b2.reshape(1, DH),
      "df_w3": df_w3.astype(jnp.bfloat16), "df_b3": df_b3.reshape(1, DH),
      "df_w4": df_w4.astype(jnp.bfloat16), "df_b4": df_b4.reshape(1, D),
      # structural matrices stay f32 (decomposition / difference accuracy)
      "avg_T": jnp.asarray(A.T),                                  # (T, T)
      "d2m": jnp.asarray(D2.T),                                   # (T, T-2)
      "alpha_bars": _cosine_alpha_bars(NUM_DIFFUSION_STEPS),
  }


# ---------------- forward -------------------------------------------------------
@jax.jit
def forward(params, x, condition, key):
  B, T, D = x.shape
  C, TE = CONDITION_DIM, TIME_EMB_DIM
  H, DH = SPLINE_HIDDEN, DIFF_HIDDEN

  # layout plumbing: single lane-dense (B, D, T) view of the trajectory
  x_bdt = jnp.transpose(x.astype(jnp.float32), (0, 2, 1))         # (B, D, T)
  cond3 = condition.astype(jnp.float32).reshape(B, 1, C)          # (B, 1, C)

  # forward-diffusion randomness (wrapper side, like the torch module)
  k_t, k_n = jax.random.split(key)
  timesteps = jax.random.randint(k_t, (B,), 0, NUM_DIFFUSION_STEPS)
  noise_bdt = jax.random.normal(k_n, (B, D, T), jnp.float32)      # (B, D, T)
  ab = params["alpha_bars"][timesteps]                            # (B,)
  ab_tab = jnp.stack([jnp.sqrt(ab), jnp.sqrt(1.0 - ab)], axis=1)  # (B, 2) SMEM
  temb = _sinusoidal_time_embedding(timesteps, TE).reshape(B, 1, TE)

  cparams = pltpu.CompilerParams(
      dimension_semantics=("parallel",),
      vmem_limit_bytes=VMEM_LIMIT_BYTES)

  # ------------- kernel 1: decompose + spline + partial losses --------------
  k1 = functools.partial(_decompose_spline_kernel, D=D, T=T)
  lp_bdt, high_bdt, part1 = pl.pallas_call(
      k1,
      grid=(B,),
      in_specs=[
          pl.BlockSpec((1, D, T), lambda b: (b, 0, 0)),           # x
          pl.BlockSpec((1, 1, C), lambda b: (b, 0, 0)),           # condition
          pl.BlockSpec((T, T), lambda b: (0, 0)),                 # avg^T
          pl.BlockSpec((T, T - 2), lambda b: (0, 0)),             # D2^T
          pl.BlockSpec((C, H), lambda b: (0, 0)),
          pl.BlockSpec((1, H), lambda b: (0, 0)),
          pl.BlockSpec((H, H), lambda b: (0, 0)),
          pl.BlockSpec((1, H), lambda b: (0, 0)),
          pl.BlockSpec((D, H, T), lambda b: (0, 0, 0)),
          pl.BlockSpec((D, 1, T), lambda b: (0, 0, 0)),
      ],
      out_specs=(
          pl.BlockSpec((1, D, T), lambda b: (b, 0, 0)),           # low_freq_pred
          pl.BlockSpec((1, D, T), lambda b: (b, 0, 0)),           # high_freq
          pl.BlockSpec((1, 1, PARTIAL_W), lambda b: (b, 0, 0)),   # partials
      ),
      out_shape=(
          jax.ShapeDtypeStruct((B, D, T), jnp.float32),
          jax.ShapeDtypeStruct((B, D, T), jnp.float32),
          jax.ShapeDtypeStruct((B, 1, PARTIAL_W), jnp.float32),
      ),
      compiler_params=cparams,
  )(x_bdt, cond3, params["avg_T"], params["d2m"],
    params["sp_w1"], params["sp_b1"], params["sp_w2"], params["sp_b2"],
    params["w_eff"], params["b_eff"])

  # ------------- tiny scalar combination in the wrapper ---------------------
  n_el = float(B * T * D)
  low_sq = jnp.sum(part1[:, 0, 0])
  low_sm = jnp.sum(part1[:, 0, 1])
  s_high = jnp.sum(part1[:, 0, 2])
  ss_high = jnp.sum(part1[:, 0, 3])

  mean = s_high / n_el
  var = jnp.maximum(ss_high - n_el * mean * mean, 0.0) / (n_el - 1.0)  # ddof=1
  std = jnp.sqrt(var) + 1e-6
  stats = jnp.stack([mean, 1.0 / std]).reshape(1, 2)              # SMEM scalars

  # ------------- kernel 2: normalize + add noise + diffusion MLP ------------
  k2 = functools.partial(_diffusion_kernel, D=D, T=T)
  pred_bdt, part2 = pl.pallas_call(
      k2,
      grid=(B,),
      in_specs=[
          pl.BlockSpec((1, D, T), lambda b: (b, 0, 0)),           # high_freq
          pl.BlockSpec((1, D, T), lambda b: (b, 0, 0)),           # noise
          pl.BlockSpec((1, 1, C), lambda b: (b, 0, 0)),           # condition
          pl.BlockSpec((1, 1, TE), lambda b: (b, 0, 0)),          # time emb
          pl.BlockSpec(memory_space=pltpu.MemorySpace.SMEM),      # mean/inv_std
          pl.BlockSpec(memory_space=pltpu.MemorySpace.SMEM),      # sqrt ab tab
          pl.BlockSpec((T, T - 2), lambda b: (0, 0)),             # D2^T
          pl.BlockSpec((D, DH), lambda b: (0, 0)),                # W1 (x part)
          pl.BlockSpec((TE, DH), lambda b: (0, 0)),               # W1 (t part)
          pl.BlockSpec((C, DH), lambda b: (0, 0)),                # W1 (c part)
          pl.BlockSpec((1, DH), lambda b: (0, 0)),
          pl.BlockSpec((DH, DH), lambda b: (0, 0)),
          pl.BlockSpec((1, DH), lambda b: (0, 0)),
          pl.BlockSpec((DH, DH), lambda b: (0, 0)),
          pl.BlockSpec((1, DH), lambda b: (0, 0)),
          pl.BlockSpec((DH, D), lambda b: (0, 0)),
          pl.BlockSpec((1, D), lambda b: (0, 0)),
      ],
      out_specs=(
          pl.BlockSpec((1, D, T), lambda b: (b, 0, 0)),           # pred noise
          pl.BlockSpec((1, 1, PARTIAL_W), lambda b: (b, 0, 0)),   # partials
      ),
      out_shape=(
          jax.ShapeDtypeStruct((B, D, T), jnp.float32),
          jax.ShapeDtypeStruct((B, 1, PARTIAL_W), jnp.float32),
      ),
      compiler_params=cparams,
  )(high_bdt, noise_bdt, cond3, temb, stats, ab_tab, params["d2m"],
    params["df_wx"], params["df_wt"], params["df_wc"], params["df_b1"],
    params["df_w2"], params["df_b2"], params["df_w3"], params["df_b3"],
    params["df_w4"], params["df_b4"])

  # ------------- final scalar losses -----------------------------------------
  denom_sm = float(B * (T - 2))
  low_freq_loss = low_sq / n_el
  low_freq_smoothness = low_sm / denom_sm
  high_freq_loss = jnp.sum(part2[:, 0, 0]) / n_el
  high_freq_smoothness = jnp.sum(part2[:, 0, 1]) / denom_sm
  total_loss = (low_freq_loss * 100.0 + high_freq_loss +
                low_freq_smoothness * 0.01 + high_freq_smoothness * 0.001)

  to_btd = lambda a: jnp.transpose(a, (0, 2, 1))
  return {
      "low_freq_loss": low_freq_loss,
      "high_freq_loss": high_freq_loss,
      "low_freq_smoothness": low_freq_smoothness,
      "high_freq_smoothness": high_freq_smoothness,
      "total_loss": total_loss,
      "low_freq_pred": to_btd(lp_bdt),
      "high_freq_target": to_btd(high_bdt),
      "predicted_noise": to_btd(pred_bdt),
      "actual_noise": to_btd(noise_bdt),
  }


if __name__ == "__main__":
  key = jax.random.PRNGKey(0)
  B, T = 2, 16
  kx, kc, kp, kf = jax.random.split(key, 4)
  x = jax.random.normal(kx, (B, T, INPUT_DIM), jnp.float32)
  condition = jax.random.normal(kc, (B, CONDITION_DIM), jnp.float32)
  params = init_params(kp, T)

  out = forward(params, x, condition, kf)
  jax.block_until_ready(out)

  assert out["low_freq_pred"].shape == (B, T, INPUT_DIM)
  assert out["high_freq_target"].shape == (B, T, INPUT_DIM)
  assert out["predicted_noise"].shape == (B, T, INPUT_DIM)
  assert out["actual_noise"].shape == (B, T, INPUT_DIM)
  assert out["total_loss"].shape == ()
  assert bool(jnp.isfinite(out["total_loss"]))
  print("KERNEL_OK")
</pallas_src>

<mosaic_0001>
module attributes {stable_mosaic.version = 11 : i64} {
  func.func @_decompose_spline_kernel(%arg0: i32, %arg1: memref<1x2x16xf32, #tpu.memory_space<vmem>>, %arg2: memref<1x1x5xf32, #tpu.memory_space<vmem>>, %arg3: memref<16x16xf32, #tpu.memory_space<vmem>>, %arg4: memref<16x14xf32, #tpu.memory_space<vmem>>, %arg5: memref<5x128xbf16, #tpu.memory_space<vmem>>, %arg6: memref<1x128xf32, #tpu.memory_space<vmem>>, %arg7: memref<128x128xbf16, #tpu.memory_space<vmem>>, %arg8: memref<1x128xf32, #tpu.memory_space<vmem>>, %arg9: memref<2x128x16xbf16, #tpu.memory_space<vmem>>, %arg10: memref<2x1x16xf32, #tpu.memory_space<vmem>>, %arg11: memref<1x2x16xf32, #tpu.memory_space<vmem>>, %arg12: memref<1x2x16xf32, #tpu.memory_space<vmem>>, %arg13: memref<1x1x128xf32, #tpu.memory_space<vmem>>) attributes {dimension_semantics = [#tpu.dimension_semantics<parallel>], iteration_bounds = array<i64: 2>, scalar_prefetch = 0 : i64, scratch_operands = 0 : i64, tpu.core_type = #tpu.core_type<tc>, window_params = [{transform_indices = @transform_0, window_bounds = array<i64: 1, 2, 16>}, {transform_indices = @transform_1, window_bounds = array<i64: 1, 1, 5>}, {pipeline_mode = #tpu.pipeline_mode<synchronous>, transform_indices = @transform_2, window_bounds = array<i64: 16, 16>}, {pipeline_mode = #tpu.pipeline_mode<synchronous>, transform_indices = @transform_3, window_bounds = array<i64: 16, 14>}, {pipeline_mode = #tpu.pipeline_mode<synchronous>, transform_indices = @transform_4, window_bounds = array<i64: 5, 128>}, {pipeline_mode = #tpu.pipeline_mode<synchronous>, transform_indices = @transform_5, window_bounds = array<i64: 1, 128>}, {pipeline_mode = #tpu.pipeline_mode<synchronous>, transform_indices = @transform_6, window_bounds = array<i64: 128, 128>}, {pipeline_mode = #tpu.pipeline_mode<synchronous>, transform_indices = @transform_7, window_bounds = array<i64: 1, 128>}, {pipeline_mode = #tpu.pipeline_mode<synchronous>, transform_indices = @transform_8, window_bounds = array<i64: 2, 128, 16>}, {pipeline_mode = #tpu.pipeline_mode<synchronous>, transform_indices = @transform_9, window_bounds = array<i64: 2, 1, 16>}, {transform_indices = @transform_10, window_bounds = array<i64: 1, 2, 16>}, {transform_indices = @transform_11, window_bounds = array<i64: 1, 2, 16>}, {transform_indices = @transform_12, window_bounds = array<i64: 1, 1, 128>}]} {
    %c0 = arith.constant 0 : index
    %c0_0 = arith.constant 0 : index
    %c0_1 = arith.constant 0 : index
    %0 = vector.load %arg1[%c0, %c0_0, %c0_1] : memref<1x2x16xf32, #tpu.memory_space<vmem>>, vector<1x2x16xf32>
    %1 = vector.shape_cast %0 : vector<1x2x16xf32> to vector<2x16xf32>
    %c0_2 = arith.constant 0 : index
    %c0_3 = arith.constant 0 : index
    %2 = vector.load %arg3[%c0_2, %c0_3] : memref<16x16xf32, #tpu.memory_space<vmem>>, vector<16x16xf32>
    %cst = arith.constant dense<0.000000e+00> : vector<2x16xf32>
    %3 = tpu.matmul %1, %2, %cst {dimension_numbers = #tpu.dot_dimension_numbers<[1], [0], [0], [1], [0, 0, 1, 1], [], []>} : vector<2x16xf32>, vector<16x16xf32>, vector<2x16xf32> -> vector<2x16xf32>
    %4 = arith.subf %1, %3 : vector<2x16xf32>
    %c0_4 = arith.constant 0 : index
    %c0_5 = arith.constant 0 : index
    %c0_6 = arith.constant 0 : index
    %5 = vector.load %arg12[%c0_4, %c0_5, %c0_6] : memref<1x2x16xf32, #tpu.memory_space<vmem>>, vector<1x2x16xf32>
    %6 = vector.shape_cast %5 : vector<1x2x16xf32> to vector<2x16xf32>
    %7 = vector.shape_cast %4 : vector<2x16xf32> to vector<1x2x16xf32>
    tpu.vector_store %arg12[%c0_4, %c0_5, %c0_6], %7 {strides = array<i32>} : memref<1x2x16xf32, #tpu.memory_space<vmem>>, vector<1x2x16xf32>,
    %c0_7 = arith.constant 0 : index
    %c0_8 = arith.constant 0 : index
    %c0_9 = arith.constant 0 : index
    %8 = vector.load %arg2[%c0_7, %c0_8, %c0_9] : memref<1x1x5xf32, #tpu.memory_space<vmem>>, vector<1x1x5xf32>
    %9 = vector.shape_cast %8 : vector<1x1x5xf32> to vector<1x5xf32>
    %10 = arith.truncf %9 : vector<1x5xf32> to vector<1x5xbf16>
    %c0_10 = arith.constant 0 : index
    %c0_11 = arith.constant 0 : index
    %11 = vector.load %arg5[%c0_10, %c0_11] : memref<5x128xbf16, #tpu.memory_space<vmem>>, vector<5x128xbf16>
    %cst_12 = arith.constant dense<0.000000e+00> : vector<1x128xf32>
    %12 = tpu.matmul %10, %11, %cst_12 {dimension_numbers = #tpu.dot_dimension_numbers<[1], [0], [0], [1], [0, 0, 1, 1], [], []>} : vector<1x5xbf16>, vector<5x128xbf16>, vector<1x128xf32> -> vector<1x128xf32>
    %c0_13 = arith.constant 0 : index
    %c0_14 = arith.constant 0 : index
    %13 = vector.load %arg6[%c0_13, %c0_14] : memref<1x128xf32, #tpu.memory_space<vmem>>, vector<1x128xf32>
    %14 = arith.addf %12, %13 : vector<1x128xf32>
    %cst_15 = arith.constant 0.000000e+00 : f32
    %15 = vector.broadcast %cst_15 : f32 to vector<1x128xf32>
    %16 = arith.maximumf %14, %15 : vector<1x128xf32>
    %17 = arith.truncf %16 : vector<1x128xf32> to vector<1x128xbf16>
    %c0_16 = arith.constant 0 : index
    %c0_17 = arith.constant 0 : index
    %18 = vector.load %arg7[%c0_16, %c0_17] : memref<128x128xbf16, #tpu.memory_space<vmem>>, vector<128x128xbf16>
    %cst_18 = arith.constant dense<0.000000e+00> : vector<1x128xf32>
    %19 = tpu.matmul %17, %18, %cst_18 {dimension_numbers = #tpu.dot_dimension_numbers<[1], [0], [0], [1], [0, 0, 1, 1], [], []>} : vector<1x128xbf16>, vector<128x128xbf16>, vector<1x128xf32> -> vector<1x128xf32>
    %c0_19 = arith.constant 0 : index
    %c0_20 = arith.constant 0 : index
    %20 = vector.load %arg8[%c0_19, %c0_20] : memref<1x128xf32, #tpu.memory_space<vmem>>, vector<1x128xf32>
    %21 = arith.addf %19, %20 : vector<1x128xf32>
    %cst_21 = arith.constant 0.000000e+00 : f32
    %22 = vector.broadcast %cst_21 : f32 to vector<1x128xf32>
    %23 = arith.maximumf %21, %22 : vector<1x128xf32>
    %24 = arith.truncf %23 : vector<1x128xf32> to vector<1x128xbf16>
    %c0_22 = arith.constant 0 : index
    %c0_23 = arith.constant 0 : index
    %c0_24 = arith.constant 0 : index
    %25 = vector.load %arg9[%c0_22, %c0_23, %c0_24] : memref<2x128x16xbf16, #tpu.memory_space<vmem>>, vector<1x128x16xbf16>
    %26 = vector.shape_cast %25 : vector<1x128x16xbf16> to vector<128x16xbf16>
    %cst_25 = arith.constant dense<0.000000e+00> : vector<1x16xf32>
    %27 = tpu.matmul %24, %26, %cst_25 {dimension_numbers = #tpu.dot_dimension_numbers<[1], [0], [0], [1], [0, 0, 1, 1], [], []>} : vector<1x128xbf16>, vector<128x16xbf16>, vector<1x16xf32> -> vector<1x16xf32>
    %c0_26 = arith.constant 0 : index
    %c0_27 = arith.constant 0 : index
    %c0_28 = arith.constant 0 : index
    %28 = vector.load %arg10[%c0_26, %c0_27, %c0_28] : memref<2x1x16xf32, #tpu.memory_space<vmem>>, vector<1x1x16xf32>
    %29 = vector.shape_cast %28 : vector<1x1x16xf32> to vector<1x16xf32>
    %30 = arith.addf %27, %29 : vector<1x16xf32>
    %c1 = arith.constant 1 : index
    %c0_29 = arith.constant 0 : index
    %c0_30 = arith.constant 0 : index
    %31 = vector.load %arg9[%c1, %c0_29, %c0_30] : memref<2x128x16xbf16, #tpu.memory_space<vmem>>, vector<1x128x16xbf16>
    %32 = vector.shape_cast %31 : vector<1x128x16xbf16> to vector<128x16xbf16>
    %cst_31 = arith.constant dense<0.000000e+00> : vector<1x16xf32>
    %33 = tpu.matmul %24, %32, %cst_31 {dimension_numbers = #tpu.dot_dimension_numbers<[1], [0], [0], [1], [0, 0, 1, 1], [], []>} : vector<1x128xbf16>, vector<128x16xbf16>, vector<1x16xf32> -> vector<1x16xf32>
    %c1_32 = arith.constant 1 : index
    %c0_33 = arith.constant 0 : index
    %c0_34 = arith.constant 0 : index
    %34 = vector.load %arg10[%c1_32, %c0_33, %c0_34] : memref<2x1x16xf32, #tpu.memory_space<vmem>>, vector<1x1x16xf32>
    %35 = vector.shape_cast %34 : vector<1x1x16xf32> to vector<1x16xf32>
    %36 = arith.addf %33, %35 : vector<1x16xf32>
    %37 = tpu.concatenate %30, %36 in 0 : vector<1x16xf32>, vector<1x16xf32> -> vector<2x16xf32>
    %c0_35 = arith.constant 0 : index
    %c0_36 = arith.constant 0 : index
    %c0_37 = arith.constant 0 : index
    %38 = vector.load %arg11[%c0_35, %c0_36, %c0_37] : memref<1x2x16xf32, #tpu.memory_space<vmem>>, vector<1x2x16xf32>
    %39 = vector.shape_cast %38 : vector<1x2x16xf32> to vector<2x16xf32>
    %40 = vector.shape_cast %37 : vector<2x16xf32> to vector<1x2x16xf32>
    tpu.vector_store %arg11[%c0_35, %c0_36, %c0_37], %40 {strides = array<i32>} : memref<1x2x16xf32, #tpu.memory_space<vmem>>, vector<1x2x16xf32>,
    %41 = arith.subf %37, %3 : vector<2x16xf32>
    %42 = arith.mulf %41, %41 : vector<2x16xf32>
    %43 = vector.shape_cast %42 : vector<2x16xf32> to vector<1x2x16xf32>
    %cst_38 = arith.constant dense<0.000000e+00> : vector<1xf32>
    %44 = vector.multi_reduction <add>, %43, %cst_38 [1, 2] : vector<1x2x16xf32> to vector<1xf32>
    %45 = vector.shape_cast %44 : vector<1xf32> to vector<1x1x1xf32>
    %46 = vector.extract %45[0, 0, 0] : f32 from vector<1x1x1xf32>
    %c0_39 = arith.constant 0 : index
    %c0_40 = arith.constant 0 : index
    %47 = vector.load %arg4[%c0_39, %c0_40] : memref<16x14xf32, #tpu.memory_space<vmem>>, vector<16x14xf32>
    %cst_41 = arith.constant dense<0.000000e+00> : vector<2x14xf32>
    %48 = tpu.matmul %37, %47, %cst_41 {dimension_numbers = #tpu.dot_dimension_numbers<[1], [0], [0], [1], [0, 0, 1, 1], [], []>} : vector<2x16xf32>, vector<16x14xf32>, vector<2x14xf32> -> vector<2x14xf32>
    %49 = arith.mulf %48, %48 : vector<2x14xf32>
    %50 = vector.shape_cast %49 : vector<2x14xf32> to vector<1x2x14xf32>
    %cst_42 = arith.constant dense<0.000000e+00> : vector<1xf32>
    %51 = vector.multi_reduction <add>, %50, %cst_42 [1, 2] : vector<1x2x14xf32> to vector<1xf32>
    %52 = vector.shape_cast %51 : vector<1xf32> to vector<1x1x1xf32>
    %53 = vector.extract %52[0, 0, 0] : f32 from vector<1x1x1xf32>
    %54 = vector.shape_cast %4 : vector<2x16xf32> to vector<1x2x16xf32>
    %cst_43 = arith.constant dense<0.000000e+00> : vector<1xf32>
    %55 = vector.multi_reduction <add>, %54, %cst_43 [1, 2] : vector<1x2x16xf32> to vector<1xf32>
    %56 = vector.shape_cast %55 : vector<1xf32> to vector<1x1x1xf32>
    %57 = vector.extract %56[0, 0, 0] : f32 from vector<1x1x1xf32>
    %58 = arith.mulf %4, %4 : vector<2x16xf32>
    %59 = vector.shape_cast %58 : vector<2x16xf32> to vector<1x2x16xf32>
    %cst_44 = arith.constant dense<0.000000e+00> : vector<1xf32>
    %60 = vector.multi_reduction <add>, %59, %cst_44 [1, 2] : vector<1x2x16xf32> to vector<1xf32>
    %61 = vector.shape_cast %60 : vector<1xf32> to vector<1x1x1xf32>
    %62 = vector.extract %61[0, 0, 0] : f32 from vector<1x1x1xf32>
    %63 = tpu.iota {dimensions = array<i32: 1>} : vector<1x128xi32>
    %cst_45 = arith.constant 0.000000e+00 : f32
    %64 = vector.broadcast %cst_45 : f32 to vector<1x128xf32>
    %c0_i32 = arith.constant 0 : i32
    %65 = vector.broadcast %c0_i32 : i32 to vector<1x128xi32>
    %66 = arith.cmpi eq, %63, %65 : vector<1x128xi32>
    %67 = vector.broadcast %46 : f32 to vector<1x128xf32>
    %68 = arith.select %66, %67, %64 : vector<1x128xi1>, vector<1x128xf32>
    %c1_i32 = arith.constant 1 : i32
    %69 = vector.broadcast %c1_i32 : i32 to vector<1x128xi32>
    %70 = arith.cmpi eq, %63, %69 : vector<1x128xi32>
    %71 = vector.broadcast %53 : f32 to vector<1x128xf32>
    %72 = arith.select %70, %71, %68 : vector<1x128xi1>, vector<1x128xf32>
    %c2_i32 = arith.constant 2 : i32
    %73 = vector.broadcast %c2_i32 : i32 to vector<1x128xi32>
    %74 = arith.cmpi eq, %63, %73 : vector<1x128xi32>
    %75 = vector.broadcast %57 : f32 to vector<1x128xf32>
    %76 = arith.select %74, %75, %72 : vector<1x128xi1>, vector<1x128xf32>
    %c3_i32 = arith.constant 3 : i32
    %77 = vector.broadcast %c3_i32 : i32 to vector<1x128xi32>
    %78 = arith.cmpi eq, %63, %77 : vector<1x128xi32>
    %79 = vector.broadcast %62 : f32 to vector<1x128xf32>
    %80 = arith.select %78, %79, %76 : vector<1x128xi1>, vector<1x128xf32>
    %c0_46 = arith.constant 0 : index
    %c0_47 = arith.constant 0 : index
    %c0_48 = arith.constant 0 : index
    %81 = vector.load %arg13[%c0_46, %c0_47, %c0_48] : memref<1x1x128xf32, #tpu.memory_space<vmem>>, vector<1x1x128xf32>
    %82 = vector.shape_cast %81 : vector<1x1x128xf32> to vector<1x128xf32>
    %83 = vector.shape_cast %80 : vector<1x128xf32> to vector<1x1x128xf32>
    tpu.vector_store %arg13[%c0_46, %c0_47, %c0_48], %83 {strides = array<i32>} : memref<1x1x128xf32, #tpu.memory_space<vmem>>, vector<1x1x128xf32>,
    return
  }
  func.func @transform_0(%arg0: i32) -> (i32, i32, i32) {
    %c0_i32 = arith.constant 0 : i32
    %c0_i32_0 = arith.constant 0 : i32
    %c0_i32_1 = arith.constant 0 : i32
    return %arg0, %c0_i32, %c0_i32_0 : i32, i32, i32
  }
  func.func @transform_1(%arg0: i32) -> (i32, i32, i32) {
    %c0_i32 = arith.constant 0 : i32
    %c0_i32_0 = arith.constant 0 : i32
    %c0_i32_1 = arith.constant 0 : i32
    return %arg0, %c0_i32, %c0_i32_0 : i32, i32, i32
  }
  func.func @transform_2(%arg0: i32) -> (i32, i32) {
    %c0_i32 = arith.constant 0 : i32
    %c0_i32_0 = arith.constant 0 : i32
    %c0_i32_1 = arith.constant 0 : i32
    return %c0_i32, %c0_i32_0 : i32, i32
  }
  func.func @transform_3(%arg0: i32) -> (i32, i32) {
    %c0_i32 = arith.constant 0 : i32
    %c0_i32_0 = arith.constant 0 : i32
    %c0_i32_1 = arith.constant 0 : i32
    return %c0_i32, %c0_i32_0 : i32, i32
  }
  func.func @transform_4(%arg0: i32) -> (i32, i32) {
    %c0_i32 = arith.constant 0 : i32
    %c0_i32_0 = arith.constant 0 : i32
    %c0_i32_1 = arith.constant 0 : i32
    return %c0_i32, %c0_i32_0 : i32, i32
  }
  func.func @transform_5(%arg0: i32) -> (i32, i32) {
    %c0_i32 = arith.constant 0 : i32
    %c0_i32_0 = arith.constant 0 : i32
    %c0_i32_1 = arith.constant 0 : i32
    return %c0_i32, %c0_i32_0 : i32, i32
  }
  func.func @transform_6(%arg0: i32) -> (i32, i32) {
    %c0_i32 = arith.constant 0 : i32
    %c0_i32_0 = arith.constant 0 : i32
    %c0_i32_1 = arith.constant 0 : i32
    return %c0_i32, %c0_i32_0 : i32, i32
  }
  func.func @transform_7(%arg0: i32) -> (i32, i32) {
    %c0_i32 = arith.constant 0 : i32
    %c0_i32_0 = arith.constant 0 : i32
    %c0_i32_1 = arith.constant 0 : i32
    return %c0_i32, %c0_i32_0 : i32, i32
  }
  func.func @transform_8(%arg0: i32) -> (i32, i32, i32) {
    %c0_i32 = arith.constant 0 : i32
    %c0_i32_0 = arith.constant 0 : i32
    %c0_i32_1 = arith.constant 0 : i32
    %c0_i32_2 = arith.constant 0 : i32
    return %c0_i32, %c0_i32_0, %c0_i32_1 : i32, i32, i32
  }
  func.func @transform_9(%arg0: i32) -> (i32, i32, i32) {
    %c0_i32 = arith.constant 0 : i32
    %c0_i32_0 = arith.constant 0 : i32
    %c0_i32_1 = arith.constant 0 : i32
    %c0_i32_2 = arith.constant 0 : i32
    return %c0_i32, %c0_i32_0, %c0_i32_1 : i32, i32, i32
  }
  func.func @transform_10(%arg0: i32) -> (i32, i32, i32) {
    %c0_i32 = arith.constant 0 : i32
    %c0_i32_0 = arith.constant 0 : i32
    %c0_i32_1 = arith.constant 0 : i32
    return %arg0, %c0_i32, %c0_i32_0 : i32, i32, i32
  }
  func.func @transform_11(%arg0: i32) -> (i32, i32, i32) {
    %c0_i32 = arith.constant 0 : i32
    %c0_i32_0 = arith.constant 0 : i32
    %c0_i32_1 = arith.constant 0 : i32
    return %arg0, %c0_i32, %c0_i32_0 : i32, i32, i32
  }
  func.func @transform_12(%arg0: i32) -> (i32, i32, i32) {
    %c0_i32 = arith.constant 0 : i32
    %c0_i32_0 = arith.constant 0 : i32
    %c0_i32_1 = arith.constant 0 : i32
    return %arg0, %c0_i32, %c0_i32_0 : i32, i32, i32
  }
}

module attributes {stable_mosaic.version = 11 : i64} {
  func.func @_diffusion_kernel(%arg0: i32, %arg1: memref<1x2x16xf32, #tpu.memory_space<vmem>>, %arg2: memref<1x2x16xf32, #tpu.memory_space<vmem>>, %arg3: memref<1x1x5xf32, #tpu.memory_space<vmem>>, %arg4: memref<1x1x32xf32, #tpu.memory_space<vmem>>, %arg5: memref<1x2xf32, #tpu.memory_space<smem>>, %arg6: memref<2x2xf32, #tpu.memory_space<smem>>, %arg7: memref<16x14xf32, #tpu.memory_space<vmem>>, %arg8: memref<2x128xf32, #tpu.memory_space<vmem>>, %arg9: memref<32x128xbf16, #tpu.memory_space<vmem>>, %arg10: memref<5x128xbf16, #tpu.memory_space<vmem>>, %arg11: memref<1x128xf32, #tpu.memory_space<vmem>>, %arg12: memref<128x128xbf16, #tpu.memory_space<vmem>>, %arg13: memref<1x128xf32, #tpu.memory_space<vmem>>, %arg14: memref<128x128xbf16, #tpu.memory_space<vmem>>, %arg15: memref<1x128xf32, #tpu.memory_space<vmem>>, %arg16: memref<128x2xbf16, #tpu.memory_space<vmem>>, %arg17: memref<1x2xf32, #tpu.memory_space<vmem>>, %arg18: memref<1x2x16xf32, #tpu.memory_space<vmem>>, %arg19: memref<1x1x128xf32, #tpu.memory_space<vmem>>) attributes {dimension_semantics = [#tpu.dimension_semantics<parallel>], iteration_bounds = array<i64: 2>, scalar_prefetch = 0 : i64, scratch_operands = 0 : i64, tpu.core_type = #tpu.core_type<tc>, window_params = [{transform_indices = @transform_0, window_bounds = array<i64: 1, 2, 16>}, {transform_indices = @transform_1, window_bounds = array<i64: 1, 2, 16>}, {transform_indices = @transform_2, window_bounds = array<i64: 1, 1, 5>}, {transform_indices = @transform_3, window_bounds = array<i64: 1, 1, 32>}, {transform_indices = @transform_4, window_bounds = array<i64: 1, 2>}, {transform_indices = @transform_5, window_bounds = array<i64: 2, 2>}, {pipeline_mode = #tpu.pipeline_mode<synchronous>, transform_indices = @transform_6, window_bounds = array<i64: 16, 14>}, {pipeline_mode = #tpu.pipeline_mode<synchronous>, transform_indices = @transform_7, window_bounds = array<i64: 2, 128>}, {pipeline_mode = #tpu.pipeline_mode<synchronous>, transform_indices = @transform_8, window_bounds = array<i64: 32, 128>}, {pipeline_mode = #tpu.pipeline_mode<synchronous>, transform_indices = @transform_9, window_bounds = array<i64: 5, 128>}, {pipeline_mode = #tpu.pipeline_mode<synchronous>, transform_indices = @transform_10, window_bounds = array<i64: 1, 128>}, {pipeline_mode = #tpu.pipeline_mode<synchronous>, transform_indices = @transform_11, window_bounds = array<i64: 128, 128>}, {pipeline_mode = #tpu.pipeline_mode<synchronous>, transform_indices = @transform_12, window_bounds = array<i64: 1, 128>}, {pipeline_mode = #tpu.pipeline_mode<synchronous>, transform_indices = @transform_13, window_bounds = array<i64: 128, 128>}, {pipeline_mode = #tpu.pipeline_mode<synchronous>, transform_indices = @transform_14, window_bounds = array<i64: 1, 128>}, {pipeline_mode = #tpu.pipeline_mode<synchronous>, transform_indices = @transform_15, window_bounds = array<i64: 128, 2>}, {pipeline_mode = #tpu.pipeline_mode<synchronous>, transform_indices = @transform_16, window_bounds = array<i64: 1, 2>}, {transform_indices = @transform_17, window_bounds = array<i64: 1, 2, 16>}, {transform_indices = @transform_18, window_bounds = array<i64: 1, 1, 128>}]} {
    %c0 = arith.constant 0 : index
    %c0_0 = arith.constant 0 : index
    %0 = memref.load %arg5[%c0, %c0_0] : memref<1x2xf32, #tpu.memory_space<smem>>
    %c0_1 = arith.constant 0 : index
    %c1 = arith.constant 1 : index
    %1 = memref.load %arg5[%c0_1, %c1] : memref<1x2xf32, #tpu.memory_space<smem>>
    %2 = arith.index_cast %arg0 : i32 to index
    %c0_2 = arith.constant 0 : index
    %3 = memref.load %arg6[%2, %c0_2] : memref<2x2xf32, #tpu.memory_space<smem>>
    %4 = arith.index_cast %arg0 : i32 to index
    %c1_3 = arith.constant 1 : index
    %5 = memref.load %arg6[%4, %c1_3] : memref<2x2xf32, #tpu.memory_space<smem>>
    %c0_4 = arith.constant 0 : index
    %c0_5 = arith.constant 0 : index
    %c0_6 = arith.constant 0 : index
    %6 = vector.load %arg1[%c0_4, %c0_5, %c0_6] : memref<1x2x16xf32, #tpu.memory_space<vmem>>, vector<1x2x16xf32>
    %7 = vector.shape_cast %6 : vector<1x2x16xf32> to vector<2x16xf32>
    %c0_7 = arith.constant 0 : index
    %c0_8 = arith.constant 0 : index
    %c0_9 = arith.constant 0 : index
    %8 = vector.load %arg2[%c0_7, %c0_8, %c0_9] : memref<1x2x16xf32, #tpu.memory_space<vmem>>, vector<1x2x16xf32>
    %9 = vector.shape_cast %8 : vector<1x2x16xf32> to vector<2x16xf32>
    %10 = vector.broadcast %0 : f32 to vector<2x16xf32>
    %11 = arith.subf %7, %10 : vector<2x16xf32>
    %12 = arith.mulf %1, %3 : f32
    %13 = vector.broadcast %12 : f32 to vector<2x16xf32>
    %14 = arith.mulf %11, %13 : vector<2x16xf32>
    %15 = vector.broadcast %5 : f32 to vector<2x16xf32>
    %16 = arith.mulf %9, %15 : vector<2x16xf32>
    %17 = arith.addf %14, %16 : vector<2x16xf32>
    %18 = tpu.transpose %17, [1, 0] : vector<2x16xf32> -> vector<16x2xf32>
    %c0_10 = arith.constant 0 : index
    %c0_11 = arith.constant 0 : index
    %c0_12 = arith.constant 0 : index
    %19 = vector.load %arg3[%c0_10, %c0_11, %c0_12] : memref<1x1x5xf32, #tpu.memory_space<vmem>>, vector<1x1x5xf32>
    %20 = vector.shape_cast %19 : vector<1x1x5xf32> to vector<1x5xf32>
    %c0_13 = arith.constant 0 : index
    %c0_14 = arith.constant 0 : index
    %c0_15 = arith.constant 0 : index
    %21 = vector.load %arg4[%c0_13, %c0_14, %c0_15] : memref<1x1x32xf32, #tpu.memory_space<vmem>>, vector<1x1x32xf32>
    %22 = vector.shape_cast %21 : vector<1x1x32xf32> to vector<1x32xf32>
    %23 = arith.truncf %22 : vector<1x32xf32> to vector<1x32xbf16>
    %c0_16 = arith.constant 0 : index
    %c0_17 = arith.constant 0 : index
    %24 = vector.load %arg9[%c0_16, %c0_17] : memref<32x128xbf16, #tpu.memory_space<vmem>>, vector<32x128xbf16>
    %cst = arith.constant dense<0.000000e+00> : vector<1x128xf32>
    %25 = tpu.matmul %23, %24, %cst {dimension_numbers = #tpu.dot_dimension_numbers<[1], [0], [0], [1], [0, 0, 1, 1], [], []>} : vector<1x32xbf16>, vector<32x128xbf16>, vector<1x128xf32> -> vector<1x128xf32>
    %26 = arith.truncf %20 : vector<1x5xf32> to vector<1x5xbf16>
    %c0_18 = arith.constant 0 : index
    %c0_19 = arith.constant 0 : index
    %27 = vector.load %arg10[%c0_18, %c0_19] : memref<5x128xbf16, #tpu.memory_space<vmem>>, vector<5x128xbf16>
    %cst_20 = arith.constant dense<0.000000e+00> : vector<1x128xf32>
    %28 = tpu.matmul %26, %27, %cst_20 {dimension_numbers = #tpu.dot_dimension_numbers<[1], [0], [0], [1], [0, 0, 1, 1], [], []>} : vector<1x5xbf16>, vector<5x128xbf16>, vector<1x128xf32> -> vector<1x128xf32>
    %29 = arith.addf %25, %28 : vector<1x128xf32>
    %c0_21 = arith.constant 0 : index
    %c0_22 = arith.constant 0 : index
    %30 = vector.load %arg11[%c0_21, %c0_22] : memref<1x128xf32, #tpu.memory_space<vmem>>, vector<1x128xf32>
    %31 = arith.addf %29, %30 : vector<1x128xf32>
    %c0_23 = arith.constant 0 : index
    %c0_24 = arith.constant 0 : index
    %32 = vector.load %arg8[%c0_23, %c0_24] : memref<2x128xf32, #tpu.memory_space<vmem>>, vector<2x128xf32>
    %33 = vector.extract_strided_slice %18 {offsets = [0, 0], sizes = [16, 1], strides = [1, 1]} : vector<16x2xf32> to vector<16x1xf32>
    %34 = vector.extract_strided_slice %32 {offsets = [0, 0], sizes = [1, 128], strides = [1, 1]} : vector<2x128xf32> to vector<1x128xf32>
    %35 = vector.broadcast %33 : vector<16x1xf32> to vector<16x128xf32>
    %36 = vector.broadcast %34 : vector<1x128xf32> to vector<16x128xf32>
    %37 = arith.mulf %35, %36 : vector<16x128xf32>
    %38 = vector.broadcast %31 : vector<1x128xf32> to vector<16x128xf32>
    %39 = arith.addf %38, %37 : vector<16x128xf32>
    %40 = vector.extract_strided_slice %18 {offsets = [0, 1], sizes = [16, 1], strides = [1, 1]} : vector<16x2xf32> to vector<16x1xf32>
    %41 = vector.extract_strided_slice %32 {offsets = [1, 0], sizes = [1, 128], strides = [1, 1]} : vector<2x128xf32> to vector<1x128xf32>
    %42 = vector.broadcast %40 : vector<16x1xf32> to vector<16x128xf32>
    %43 = vector.broadcast %41 : vector<1x128xf32> to vector<16x128xf32>
    %44 = arith.mulf %42, %43 : vector<16x128xf32>
    %45 = arith.addf %39, %44 : vector<16x128xf32>
    %cst_25 = arith.constant 0.000000e+00 : f32
    %46 = vector.broadcast %cst_25 : f32 to vector<16x128xf32>
    %47 = arith.maximumf %45, %46 : vector<16x128xf32>
    %48 = arith.truncf %47 : vector<16x128xf32> to vector<16x128xbf16>
    %c0_26 = arith.constant 0 : index
    %c0_27 = arith.constant 0 : index
    %49 = vector.load %arg12[%c0_26, %c0_27] : memref<128x128xbf16, #tpu.memory_space<vmem>>, vector<128x128xbf16>
    %cst_28 = arith.constant dense<0.000000e+00> : vector<16x128xf32>
    %50 = tpu.matmul %48, %49, %cst_28 {dimension_numbers = #tpu.dot_dimension_numbers<[1], [0], [0], [1], [0, 0, 1, 1], [], []>} : vector<16x128xbf16>, vector<128x128xbf16>, vector<16x128xf32> -> vector<16x128xf32>
    %c0_29 = arith.constant 0 : index
    %c0_30 = arith.constant 0 : index
    %51 = vector.load %arg13[%c0_29, %c0_30] : memref<1x128xf32, #tpu.memory_space<vmem>>, vector<1x128xf32>
    %52 = vector.broadcast %51 : vector<1x128xf32> to vector<16x128xf32>
    %53 = arith.addf %50, %52 : vector<16x128xf32>
    %cst_31 = arith.constant 0.000000e+00 : f32
    %54 = vector.broadcast %cst_31 : f32 to vector<16x128xf32>
    %55 = arith.maximumf %53, %54 : vector<16x128xf32>
    %56 = arith.truncf %55 : vector<16x128xf32> to vector<16x128xbf16>
    %c0_32 = arith.constant 0 : index
    %c0_33 = arith.constant 0 : index
    %57 = vector.load %arg14[%c0_32, %c0_33] : memref<128x128xbf16, #tpu.memory_space<vmem>>, vector<128x128xbf16>
    %cst_34 = arith.constant dense<0.000000e+00> : vector<16x128xf32>
    %58 = tpu.matmul %56, %57, %cst_34 {dimension_numbers = #tpu.dot_dimension_numbers<[1], [0], [0], [1], [0, 0, 1, 1], [], []>} : vector<16x128xbf16>, vector<128x128xbf16>, vector<16x128xf32> -> vector<16x128xf32>
    %c0_35 = arith.constant 0 : index
    %c0_36 = arith.constant 0 : index
    %59 = vector.load %arg15[%c0_35, %c0_36] : memref<1x128xf32, #tpu.memory_space<vmem>>, vector<1x128xf32>
    %60 = vector.broadcast %59 : vector<1x128xf32> to vector<16x128xf32>
    %61 = arith.addf %58, %60 : vector<16x128xf32>
    %cst_37 = arith.constant 0.000000e+00 : f32
    %62 = vector.broadcast %cst_37 : f32 to vector<16x128xf32>
    %63 = arith.maximumf %61, %62 : vector<16x128xf32>
    %64 = arith.truncf %63 : vector<16x128xf32> to vector<16x128xbf16>
    %c0_38 = arith.constant 0 : index
    %c0_39 = arith.constant 0 : index
    %65 = vector.load %arg16[%c0_38, %c0_39] : memref<128x2xbf16, #tpu.memory_space<vmem>>, vector<128x2xbf16>
    %cst_40 = arith.constant dense<0.000000e+00> : vector<16x2xf32>
    %66 = tpu.matmul %64, %65, %cst_40 {dimension_numbers = #tpu.dot_dimension_numbers<[1], [0], [0], [1], [0, 0, 1, 1], [], []>} : vector<16x128xbf16>, vector<128x2xbf16>, vector<16x2xf32> -> vector<16x2xf32>
    %c0_41 = arith.constant 0 : index
    %c0_42 = arith.constant 0 : index
    %67 = vector.load %arg17[%c0_41, %c0_42] : memref<1x2xf32, #tpu.memory_space<vmem>>, vector<1x2xf32>
    %68 = vector.broadcast %67 : vector<1x2xf32> to vector<16x2xf32>
    %69 = arith.addf %66, %68 : vector<16x2xf32>
    %70 = tpu.transpose %69, [1, 0] : vector<16x2xf32> -> vector<2x16xf32>
    %c0_43 = arith.constant 0 : index
    %c0_44 = arith.constant 0 : index
    %c0_45 = arith.constant 0 : index
    %71 = vector.load %arg18[%c0_43, %c0_44, %c0_45] : memref<1x2x16xf32, #tpu.memory_space<vmem>>, vector<1x2x16xf32>
    %72 = vector.shape_cast %71 : vector<1x2x16xf32> to vector<2x16xf32>
    %73 = vector.shape_cast %70 : vector<2x16xf32> to vector<1x2x16xf32>
    tpu.vector_store %arg18[%c0_43, %c0_44, %c0_45], %73 {strides = array<i32>} : memref<1x2x16xf32, #tpu.memory_space<vmem>>, vector<1x2x16xf32>,
    %74 = arith.subf %70, %9 : vector<2x16xf32>
    %75 = arith.mulf %74, %74 : vector<2x16xf32>
    %76 = vector.shape_cast %75 : vector<2x16xf32> to vector<1x2x16xf32>
    %cst_46 = arith.constant dense<0.000000e+00> : vector<1xf32>
    %77 = vector.multi_reduction <add>, %76, %cst_46 [1, 2] : vector<1x2x16xf32> to vector<1xf32>
    %78 = vector.shape_cast %77 : vector<1xf32> to vector<1x1x1xf32>
    %79 = vector.extract %78[0, 0, 0] : f32 from vector<1x1x1xf32>
    %c0_47 = arith.constant 0 : index
    %c0_48 = arith.constant 0 : index
    %80 = vector.load %arg7[%c0_47, %c0_48] : memref<16x14xf32, #tpu.memory_space<vmem>>, vector<16x14xf32>
    %cst_49 = arith.constant dense<0.000000e+00> : vector<2x14xf32>
    %81 = tpu.matmul %70, %80, %cst_49 {dimension_numbers = #tpu.dot_dimension_numbers<[1], [0], [0], [1], [0, 0, 1, 1], [], []>} : vector<2x16xf32>, vector<16x14xf32>, vector<2x14xf32> -> vector<2x14xf32>
    %82 = arith.mulf %81, %81 : vector<2x14xf32>
    %83 = vector.shape_cast %82 : vector<2x14xf32> to vector<1x2x14xf32>
    %cst_50 = arith.constant dense<0.000000e+00> : vector<1xf32>
    %84 = vector.multi_reduction <add>, %83, %cst_50 [1, 2] : vector<1x2x14xf32> to vector<1xf32>
    %85 = vector.shape_cast %84 : vector<1xf32> to vector<1x1x1xf32>
    %86 = vector.extract %85[0, 0, 0] : f32 from vector<1x1x1xf32>
    %87 = tpu.iota {dimensions = array<i32: 1>} : vector<1x128xi32>
    %cst_51 = arith.constant 0.000000e+00 : f32
    %88 = vector.broadcast %cst_51 : f32 to vector<1x128xf32>
    %c0_i32 = arith.constant 0 : i32
    %89 = vector.broadcast %c0_i32 : i32 to vector<1x128xi32>
    %90 = arith.cmpi eq, %87, %89 : vector<1x128xi32>
    %91 = vector.broadcast %79 : f32 to vector<1x128xf32>
    %92 = arith.select %90, %91, %88 : vector<1x128xi1>, vector<1x128xf32>
    %c1_i32 = arith.constant 1 : i32
    %93 = vector.broadcast %c1_i32 : i32 to vector<1x128xi32>
    %94 = arith.cmpi eq, %87, %93 : vector<1x128xi32>
    %95 = vector.broadcast %86 : f32 to vector<1x128xf32>
    %96 = arith.select %94, %95, %92 : vector<1x128xi1>, vector<1x128xf32>
    %c0_52 = arith.constant 0 : index
    %c0_53 = arith.constant 0 : index
    %c0_54 = arith.constant 0 : index
    %97 = vector.load %arg19[%c0_52, %c0_53, %c0_54] : memref<1x1x128xf32, #tpu.memory_space<vmem>>, vector<1x1x128xf32>
    %98 = vector.shape_cast %97 : vector<1x1x128xf32> to vector<1x128xf32>
    %99 = vector.shape_cast %96 : vector<1x128xf32> to vector<1x1x128xf32>
    tpu.vector_store %arg19[%c0_52, %c0_53, %c0_54], %99 {strides = array<i32>} : memref<1x1x128xf32, #tpu.memory_space<vmem>>, vector<1x1x128xf32>,
    return
  }
  func.func @transform_0(%arg0: i32) -> (i32, i32, i32) {
    %c0_i32 = arith.constant 0 : i32
    %c0_i32_0 = arith.constant 0 : i32
    %c0_i32_1 = arith.constant 0 : i32
    return %arg0, %c0_i32, %c0_i32_0 : i32, i32, i32
  }
  func.func @transform_1(%arg0: i32) -> (i32, i32, i32) {
    %c0_i32 = arith.constant 0 : i32
    %c0_i32_0 = arith.constant 0 : i32
    %c0_i32_1 = arith.constant 0 : i32
    return %arg0, %c0_i32, %c0_i32_0 : i32, i32, i32
  }
  func.func @transform_2(%arg0: i32) -> (i32, i32, i32) {
    %c0_i32 = arith.constant 0 : i32
    %c0_i32_0 = arith.constant 0 : i32
    %c0_i32_1 = arith.constant 0 : i32
    return %arg0, %c0_i32, %c0_i32_0 : i32, i32, i32
  }
  func.func @transform_3(%arg0: i32) -> (i32, i32, i32) {
    %c0_i32 = arith.constant 0 : i32
    %c0_i32_0 = arith.constant 0 : i32
    %c0_i32_1 = arith.constant 0 : i32
    return %arg0, %c0_i32, %c0_i32_0 : i32, i32, i32
  }
  func.func @transform_4(%arg0: i32) -> (i32, i32) {
    %c0_i32 = arith.constant 0 : i32
    %c0_i32_0 = arith.constant 0 : i32
    %c0_i32_1 = arith.constant 0 : i32
    return %c0_i32, %c0_i32_0 : i32, i32
  }
  func.func @transform_5(%arg0: i32) -> (i32, i32) {
    %c0_i32 = arith.constant 0 : i32
    %c0_i32_0 = arith.constant 0 : i32
    %c0_i32_1 = arith.constant 0 : i32
    return %c0_i32, %c0_i32_0 : i32, i32
  }
  func.func @transform_6(%arg0: i32) -> (i32, i32) {
    %c0_i32 = arith.constant 0 : i32
    %c0_i32_0 = arith.constant 0 : i32
    %c0_i32_1 = arith.constant 0 : i32
    return %c0_i32, %c0_i32_0 : i32, i32
  }
  func.func @transform_7(%arg0: i32) -> (i32, i32) {
    %c0_i32 = arith.constant 0 : i32
    %c0_i32_0 = arith.constant 0 : i32
    %c0_i32_1 = arith.constant 0 : i32
    return %c0_i32, %c0_i32_0 : i32, i32
  }
  func.func @transform_8(%arg0: i32) -> (i32, i32) {
    %c0_i32 = arith.constant 0 : i32
    %c0_i32_0 = arith.constant 0 : i32
    %c0_i32_1 = arith.constant 0 : i32
    return %c0_i32, %c0_i32_0 : i32, i32
  }
  func.func @transform_9(%arg0: i32) -> (i32, i32) {
    %c0_i32 = arith.constant 0 : i32
    %c0_i32_0 = arith.constant 0 : i32
    %c0_i32_1 = arith.constant 0 : i32
    return %c0_i32, %c0_i32_0 : i32, i32
  }
  func.func @transform_10(%arg0: i32) -> (i32, i32) {
    %c0_i32 = arith.constant 0 : i32
    %c0_i32_0 = arith.constant 0 : i32
    %c0_i32_1 = arith.constant 0 : i32
    return %c0_i32, %c0_i32_0 : i32, i32
  }
  func.func @transform_11(%arg0: i32) -> (i32, i32) {
    %c0_i32 = arith.constant 0 : i32
    %c0_i32_0 = arith.constant 0 : i32
    %c0_i32_1 = arith.constant 0 : i32
    return %c0_i32, %c0_i32_0 : i32, i32
  }
  func.func @transform_12(%arg0: i32) -> (i32, i32) {
    %c0_i32 = arith.constant 0 : i32
    %c0_i32_0 = arith.constant 0 : i32
    %c0_i32_1 = arith.constant 0 : i32
    return %c0_i32, %c0_i32_0 : i32, i32
  }
  func.func @transform_13(%arg0: i32) -> (i32, i32) {
    %c0_i32 = arith.constant 0 : i32
    %c0_i32_0 = arith.constant 0 : i32
    %c0_i32_1 = arith.constant 0 : i32
    return %c0_i32, %c0_i32_0 : i32, i32
  }
  func.func @transform_14(%arg0: i32) -> (i32, i32) {
    %c0_i32 = arith.constant 0 : i32
    %c0_i32_0 = arith.constant 0 : i32
    %c0_i32_1 = arith.constant 0 : i32
    return %c0_i32, %c0_i32_0 : i32, i32
  }
  func.func @transform_15(%arg0: i32) -> (i32, i32) {
    %c0_i32 = arith.constant 0 : i32
    %c0_i32_0 = arith.constant 0 : i32
    %c0_i32_1 = arith.constant 0 : i32
    return %c0_i32, %c0_i32_0 : i32, i32
  }
  func.func @transform_16(%arg0: i32) -> (i32, i32) {
    %c0_i32 = arith.constant 0 : i32
    %c0_i32_0 = arith.constant 0 : i32
    %c0_i32_1 = arith.constant 0 : i32
    return %c0_i32, %c0_i32_0 : i32, i32
  }
  func.func @transform_17(%arg0: i32) -> (i32, i32, i32) {
    %c0_i32 = arith.constant 0 : i32
    %c0_i32_0 = arith.constant 0 : i32
    %c0_i32_1 = arith.constant 0 : i32
    return %arg0, %c0_i32, %c0_i32_0 : i32, i32, i32
  }
  func.func @transform_18(%arg0: i32) -> (i32, i32, i32) {
    %c0_i32 = arith.constant 0 : i32
    %c0_i32_0 = arith.constant 0 : i32
    %c0_i32_1 = arith.constant 0 : i32
    return %arg0, %c0_i32, %c0_i32_0 : i32, i32, i32
  }
}

</mosaic_0001>

<bundles_post_ra>
// kernel: forward.22
= control target key start
LH: loop header
LB: loop body
LE: loop exit
PB: predicated region body
PF: predicated region fallthrough
CT: control target
= control target key end

     0   :  { %s1831_s0 = inlined_call_operand.vmem [shape: f32[2,2,16], index: 0, kind: input, shape index: {}]   ;;  %s1832_s1 = inlined_call_operand.vmem [shape: f32[2,1,5], index: 1, kind: input, shape index: {}]   ;;  %s1833_s2 = inlined_call_operand.vmem [shape: f32[16,16], index: 2, kind: input, shape index: {}]   ;;  %s1834_s3 = inlined_call_operand.vmem [shape: f32[16,14], index: 3, kind: input, shape index: {}]   ;;  %s1835_s4 = inlined_call_operand.vmem [shape: bf16[5,128], index: 4, kind: input, shape index: {}]   ;;  %s1836_s5 = inlined_call_operand.vmem [shape: f32[1,128], index: 5, kind: input, shape index: {}]   ;;  %s1837_s6 = inlined_call_operand.vmem [shape: bf16[128,128], index: 6, kind: input, shape index: {}]   ;;  %s1838_s7 = inlined_call_operand.vmem [shape: f32[1,128], index: 7, kind: input, shape index: {}]   ;;  %s1839_s8 = inlined_call_operand.vmem [shape: bf16[2,128,16], index: 8, kind: input, shape index: {}]   ;;  %s1840_s9 = inlined_call_operand.vmem [shape: f32[2,1,16], index: 9, kind: input, shape index: {}]   ;;  %s1841_s10 = inlined_call_operand.hbm [shape: f32[2,2,16], index: 10, kind: output, shape index: {0}]   ;;  %s1842_s11 = inlined_call_operand.vmem [shape: f32[2,2,16], index: 11, kind: output, shape index: {1}]   ;;  %s1843_s12 = inlined_call_operand.vmem [shape: f32[2,1,128], index: 12, kind: output, shape index: {2}]  }
   0x1   :  { %1844 = sst [smem:[#allocation5_spill]] %s1831_s0 }
   0x2   :  { %1845 = sst [smem:[#allocation6_spill]] %s1832_s1 }
   0x3   :  { %1846 = sst [smem:[#allocation7_spill]] %s1833_s2 }
   0x4   :  { %1847 = sst [smem:[#allocation8_spill]] %s1834_s3 }
   0x5   :  { %18 = vsyncpa [#allocation3], 0 }
   0x6   :  { %20 = vsyncpa [#allocation3 + $0x1], 0  ;;  %s1563_s21 = smov 0   ;;  %s1565_s22 = smov 0  }
   0x7   :  { %s1567_s23 = smov 0   ;;  %s1569_s24 = smov 0  }
   0x8 LB: > { %s1584_s25 = sadd.s32 4294967295, %s1491_s24   ;;  %s1178_s26 = sadd.s32 4294967294, %s1491_s24   ;;  %s1491_s24 = sphi %s1569_s24, %s1857_s24   ;;  %s1487_s23 = sphi %s1567_s23, %s1856_s23   ;;  %s1483_s22 = sphi %s1565_s22, %s1855_s22   ;;  %s1479_s21 = sphi %s1563_s21, %s1854_s21  }
   0x9   : > { %s1588_s27 = sadd.s32 1, %s1491_s24   ;;  %s253_s28 = sadd.s32 1, %s1487_s23 }
   0xa   : > { %s250_s29 = ssub.s32 %s1491_s24, %s1588_s27  ;;  %p263_p0 = scmp.ne.s32.totalorder %s1487_s23, %s1483_s22 }
   0xb   : > { %p251_p1 = scmp.eq.s32.totalorder %s250_s29, 0  ;;  %p264_p2 = scmp.eq.s32.totalorder %s1584_s25, 1 }
   0xc   : > { %p269_p3 = scmp.ne.s32.totalorder %s1483_s22, %s1479_s21  ;;  %p270_p4 = scmp.eq.s32.totalorder %s1178_s26, 1 }
   0xd   : > { %s1599_s30 = scalar_select %p251_p1, %s1487_s23, %s253_s28  }
   0xe   : > { %p1601_p5 = por %p264_p2, %p263_p0  ;;  %p1605_p6 = por %p270_p4, %p269_p3 }
   0xf   : > { %p1181_p7 = scmp.ge.s32.totalorder %s1491_s24, 1  ;;  %p377_p8 = scmp.lt.s32.totalorder %s1491_s24, 3 }
  0x11   : > { %p378_p9 = pnand %p1181_p7, %p377_p8 }
  0x12   : > { %s1850_s2 = sld [smem:[#allocation7_spill]] (!%p378_p9)  ;;  %p428_p10 = scmp.lt.s32.totalorder (!%p378_p9), %s1584_s25, 1  ;;  %v1493_v2 = vmov (!%p378_p9), 0.0|0.0   ;;  %vm1494_vm0 = vmmov (!%p378_p9), 0   ;;  %v1495_v4 = vmov (!%p378_p9), 0.0   ;;  %vm446_vm1 = vcmask (!%p378_p9), 130048  }
  0x13   : > { %381 = sbr.rel (%p378_p9) target bundleno = 1112 (0x458), region = 60  ;;  %1348 = vmatprep.subr.bf16.mxu1 (!%p378_p9), %v1493_v2  ;;  %1272 = vmatprep.mubr.msk.f32.mxu1 (!%p378_p9), %vm1494_vm0, %v1495_v4  ;;  %vm531_vm2 = vcmask (!%p378_p9), 1041408   ;;  %vm532_vm3 = vcmask (!%p378_p9), 1042432   ;;  %v1405_v5 = vld [vmem:[%s1837_s6] sm:$0xff] (!%p378_p9)   ;;  %v1496_v7 = vmov (!%p378_p9), 65535   ;;  %v1406_v9 = vld [vmem:[%s1837_s6 + $0x8] sm:$0xff] (!%p378_p9)  }
  0x14   : > { %v525_v6 = vld [vmem:[%s1835_s4] sm:$0x7] (!%p378_p9)  ;;  %1281 = vmatprep.subr.bf16.mxu0 (!%p378_p9), %v1495_v4  ;;  %1297 = vmatprep.mubr.msk.bf16.mxu0 (!%p378_p9), %vm1494_vm0, %v1495_v4  ;;  %v533_v8 = vsel (!%p378_p9), %vm531_vm2, 4294967295, %v1496_v7  ;;  %s1851_s1 = sld [smem:[#allocation6_spill]] (!%p378_p9)  ;;  %s1852_s0 = sld [smem:[#allocation5_spill]] (!%p378_p9)  ;;  %vm527_vm4 = vcmask (!%p378_p9), 39936  }
  0x15   : > { %1282 = vmatpush3.bf16.msra.mxu0 (!%p378_p9), %v1405_v5  ;;  %v534_v10 = vsel (!%p378_p9), %vm532_vm3, %v533_v8, 0  ;;  %v1407_v15 = vld [vmem:[%s1837_s6 + $0x10] sm:$0xff] (!%p378_p9)   ;;  %v1408_v16 = vld [vmem:[%s1837_s6 + $0x18] sm:$0xff] (!%p378_p9)   ;;  %v1409_v17 = vld [vmem:[%s1837_s6 + $0x20] sm:$0xff] (!%p378_p9)   ;;  %vm521_vm5 = vcmask (!%p378_p9), 123904   ;;  %s1853_s3 = sld [smem:[#allocation8_spill]] (!%p378_p9) }
  0x16   : > { %1283 = vmatprep.subr.bf16.mxu0 (!%p378_p9), %v1495_v4  ;;  %v536_v11 = vand.u32 (!%p378_p9), %v534_v10, %v525_v6  ;;  %v1410_v18 = vld [vmem:[%s1837_s6 + $0x28] sm:$0xff] (!%p378_p9)   ;;  %v1411_v19 = vld [vmem:[%s1837_s6 + $0x30] sm:$0xff] (!%p378_p9)   ;;  %v1412_v20 = vld [vmem:[%s1837_s6 + $0x38] sm:$0xff] (!%p378_p9)   ;;  %s414_s18 = sand.u32 (!%p378_p9), 1, %s1483_s22   ;;  %vm902_vm6 = vcmask (!%p378_p9), 1040384   ;;  %vm993_vm7 = vcmask (!%p378_p9), 107520  }
  0x17   : > { %v526_v24 = vld [vmem:[%s1836_s5] sm:$0x1] (!%p378_p9)  ;;  %v1415_v37 = vld [vmem:[%s1839_s8 + $0x8] sm:$0xff] (!%p378_p9)   ;;  %v1417_v39 = vld [vmem:[%s1839_s8 + $0x10] sm:$0xff] (!%p378_p9)   ;;  %s1778_s29 = sshll.u32 (!%p378_p9), %s414_s18, 1 }
  0x18   : > { %v444_v0 = vld [vmem:[%s1850_s2] sm:$0xff] (!%p378_p9)  ;;  %v445_v1 = vld [vmem:[%s1850_s2 + $0x8] sm:$0xff] (!%p378_p9)  ;;  %v1418_v40 = vld [vmem:[%s1839_s8 + $0x50] sm:$0xff] (!%p378_p9)   ;;  %s416_s15 = scalar_lea.vmem (!%p378_p9), [#allocation2], %s1778_s29 }
  0x19   : > { %v1349_v3 = vpack.c.bf16 (!%p378_p9), %v445_v1, %v444_v0  ;;  %1284 = vmatpush3.bf16.msra.mxu0 (!%p378_p9), %v1406_v9  ;;  %v1413_v35 = vld [vmem:[%s1839_s8] sm:$0xff] (!%p378_p9)   ;;  %v1416_v38 = vld [vmem:[%s1839_s8 + $0x48] sm:$0xff] (!%p378_p9)   ;;  %v1419_v41 = vld [vmem:[%s1839_s8 + $0x18] sm:$0xff] (!%p378_p9)  }
  0x1a   : > { %s1625_s26 = scalar_select %p428_p10, %s1584_s25, 1  ;;  %1285 = vmatprep.subr.bf16.mxu0 %v1495_v4  ;;  %v1414_v36 = vld [vmem:[%s1839_s8 + $0x40] sm:$0xff]   ;;  %v1420_v42 = vld [vmem:[%s1839_s8 + $0x58] sm:$0xff]   ;;  %v1423_v45 = vld [vmem:[%s1839_s8 + $0x28] sm:$0xff]  }
  0x1b   : > { %1350 = vmatpush3.bf16.msra.mxu1 %v1349_v3  ;;  %v1421_v43 = vld [vmem:[%s1839_s8 + $0x20] sm:$0xff]   ;;  %v1424_v46 = vld [vmem:[%s1839_s8 + $0x68] sm:$0xff]   ;;  %v1425_v47 = vld [vmem:[%s1839_s8 + $0x30] sm:$0xff]  }
  0x1c   : > { %1275 = vmatprep.subr.bf16.mxu1 %v1495_v4  ;;  %s1183_s17 = sshll.u32 %s1625_s26, 1  ;;  %s434_s20 = scalar_lea.vmem %s1851_s1, %s1625_s26  ;;  %v1422_v44 = vld [vmem:[%s1839_s8 + $0x60] sm:$0xff]   ;;  %v1426_v48 = vld [vmem:[%s1839_s8 + $0x70] sm:$0xff]   ;;  %v1427_v49 = vld [vmem:[%s1839_s8 + $0x38] sm:$0xff]  }
  0x1d   : > { %s431_s2 = scalar_lea.vmem %s1852_s0, %s1183_s17  ;;  %v523_v12 = vld [vmem:[%s434_s20] sm:$0x1]  ;;  %1286 = vmatpush3.bf16.msra.mxu0 %v1407_v15  ;;  %s438_s28 = scalar_lea.vmem %s1842_s11, %s1183_s17  ;;  %v1428_v50 = vld [vmem:[%s1839_s8 + $0x78] sm:$0xff]   ;;  %v918_v56 = vld [vmem:[%s1853_s3 + $0x8] sm:$0xff] }
  0x1e   : > { %v443_v13 = vld [vmem:[%s431_s2] sm:$0x3]  ;;  %v524_v14 = vpack.c.bf16 %v523_v12, %v523_v12  ;;  %1287 = vmatprep.subr.bf16.mxu0 %v1495_v4  ;;  %s1230_s17 = sshll.u32 %s1584_s25, 5  ;;  %s1061_s20 = sshll.u32 %s416_s15, 4  ;;  %s1062_s20 = int_to_ptr.vmem [resolvable:$true] %s1061_s20 }
  0x1f   : > { %1273 = vmatmul.mubr.msk.f32.vlgmr.msra.gmra.mrb[0].mxu1 %vm446_vm1, %v443_v13  ;;  %v596_v51 = vld [vmem:[%s1838_s7] sm:$0x1]  ;;  %v1219_v62 = vld [vmem:[%s1840_s9 + $0x1] sm:$0x1]  ;;  %s1789_s2 = scalar_lea.hbm %s1841_s10, %s1230_s17  ;;  %s1429_s29 = scalar_lea.vmem %s1062_s20, 32 }
  0x20   : > { %1276 = vmatpush3.bf16.msra.mxu1 %v536_v11  ;;  %1277 = vmatprep.mubr.msk.bf16.mxu1 %vm1494_vm0, %v1495_v4  ;;  %v917_v55 = vld [vmem:[%s1853_s3] sm:$0xff]  ;;  %p1430_p11 = scmp.ne.s32.totalorder %s1062_s20, %s1429_s29  ;;  %s1497_s0 = smov [#allocation2]  }
  0x21   : > { %1301 = vmatprep.subr.bf16.mxu1 %v1495_v4  ;;  %1288 = vmatpush3.bf16.msra.mxu0 %v1408_v16  ;;  %v1352_v60 = vpack.c.bf16 %v918_v56, %v917_v55  ;;  %v703_v63 = vld [vmem:[%s1840_s9] sm:$0x1]  ;;  %s1433_s1 = sshll.u32 %s1497_s0, 4  ;;  %s1434_s1 = int_to_ptr.vmem [resolvable:$false] %s1433_s1 }
  0x22   : > { %1289 = vmatprep.subr.bf16.mxu0 %v1495_v4  ;;  %p1431_p12 = pnand %p1430_p11, %p1601_p5  ;;  %s1435_s3 = scalar_lea.vmem %s1434_s1, 64 }
  0x23   : > { %1278 = vmatmul.mubr.msk.bf16.vlgmr.msra.gmra.mrb[4].mxu1 %vm527_vm4, %v524_v14  ;;  %p1436_p0 = scmp.lt.s32.totalorder %s1062_s20, %s1434_s1  ;;  %p1437_p1 = scmp.lt.s32.totalorder %s1435_s3, %s1429_s29 }
  0x24   : > { %1317 = vmatprep.mubr.msk.bf16.mxu1 %vm1494_vm0, %v1495_v4  ;;  %1302 = vmatpush3.bf16.msra.mxu1 %v1413_v35  ;;  %p1432_p13 = pneg %p1431_p12 }
  0x25   : > { %1290 = vmatpush3.bf16.msra.mxu0 %v1409_v17  ;;  %1303 = vmatprep.subr.bf16.mxu1 %v1495_v4  ;;  %p1438_p2 = por %p1437_p1, %p1436_p0 }
  0x26   : > { %1291 = vmatprep.subr.bf16.mxu0 %v1495_v4 }
  0x27   : > { %p1439_p3 = pnand %p1438_p2, %p1432_p13 }
  0x28   : > { %1304 = vmatpush3.bf16.msra.mxu1 %v1415_v37 }
  0x29   : > { %1292 = vmatpush3.bf16.msra.mxu0 %v1410_v18  ;;  %1305 = vmatprep.subr.bf16.mxu1 %v1495_v4 }
  0x2a   : > { %1293 = vmatprep.subr.bf16.mxu0 %v1495_v4 }
  0x2c   : > { %1306 = vmatpush3.bf16.msra.mxu1 %v1417_v39 }
  0x2d   : > { %1294 = vmatpush3.bf16.msra.mxu0 %v1411_v19  ;;  %1307 = vmatprep.subr.bf16.mxu1 %v1495_v4 }
  0x2e   : > { %1295 = vmatprep.subr.bf16.mxu0 %v1495_v4 }
  0x30   : > { %1308 = vmatpush3.bf16.msra.mxu1 %v1419_v41 }
  0x31   : > { %1296 = vmatpush3.bf16.msra.mxu0 %v1412_v20  ;;  %1309 = vmatprep.subr.bf16.mxu1 %v1495_v4 }
  0x32   : > { %1321 = vmatprep.subr.bf16.mxu0 %v1495_v4 }
  0x34   : > { %1310 = vmatpush3.bf16.msra.mxu1 %v1421_v43 }
  0x35   : > { %1311 = vmatprep.subr.bf16.mxu1 %v1495_v4 }
  0x38   : > { %1312 = vmatpush3.bf16.msra.mxu1 %v1423_v45 }
  0x39   : > { %1313 = vmatprep.subr.bf16.mxu1 %v1495_v4 }
  0x3c   : > { %1314 = vmatpush3.bf16.msra.mxu1 %v1425_v47 }
  0x3d   : > { %1315 = vmatprep.subr.bf16.mxu1 %v1495_v4 }
  0x40   : > { %1316 = vmatpush3.bf16.msra.mxu1 %v1427_v49 }
  0x41   : > { %1351 = vmatprep.subr.bf16.mxu1 %v1493_v2 }
  0xf2   : > { %v1684_v21 = vpop.f32.mrb[0].mxu1 }
  0xf3   : > { %v520_v22 = vsub.f32 %v443_v13, %v1684_v21  ;;  %v1274_v23 = vpop.f32.mrb[1].mxu1 }
  0xf5   : > { %v1004_v25 = vsel %vm521_vm5, %v520_v22, 0.0  ;;  %522 = vst.msk [vmem:[%s438_s28] sm:$0x3] %vm521_vm5, %v520_v22  ;;  %v1014_v26 = vmul.f32 %v520_v22, %v520_v22  ;;  %s1041_s28 = scalar_lea.sflag [#allocation3], %s414_s18 }
  0xf6   : > { %1005 = vadd.xlane.f32.xlu1 %v1004_v25  ;;  %v572_v27 = vpop.f32.mrb[4].mxu1 }
  0xf7   : > { %v573_v28 = vadd.f32 %v572_v27, %v526_v24  ;;  %v1279_v29 = vpop.f32.mrb[5].mxu1  ;;  %v1015_v33 = vsel %vm521_vm5, %v1014_v26, 0.0 }
  0xf8   : > { %v575_v30 = vpop.f32.mrb[6].mxu1 }
  0xf9   : > { %v578_v31 = vmax.f32 %v573_v28, 0.0  ;;  %v1280_v32 = vpop.f32.mrb[7].mxu1 }
  0xfa   : > { %1016 = vadd.xlane.f32.xlu1 %v1015_v33 }
  0xfb   : > { %v579_v34 = vpack.c.bf16 %v578_v31, %v578_v31 }
  0xfd   : > { %1298 = vmatmul.mubr.bf16.vlgmr.msra.gmra.mrb[0].mxu0 %v579_v34 }
  0xfe   : > { %1337 = vmatprep.mubr.msk.bf16.mxu0 %vm1494_vm0, %v1495_v4  ;;  %1322 = vmatpush3.bf16.msra.mxu0 %v1414_v36 }
  0xff   : > { %1323 = vmatprep.subr.bf16.mxu0 %v1495_v4 }
 0x102   : > { %1324 = vmatpush3.bf16.msra.mxu0 %v1416_v38 }
 0x103   : > { %1325 = vmatprep.subr.bf16.mxu0 %v1495_v4 }
 0x106   : > { %1326 = vmatpush3.bf16.msra.mxu0 %v1418_v40 }
 0x107   : > { %1327 = vmatprep.subr.bf16.mxu0 %v1495_v4 }
 0x10a   : > { %1328 = vmatpush3.bf16.msra.mxu0 %v1420_v42 }
 0x10b   : > { %1329 = vmatprep.subr.bf16.mxu0 %v1495_v4 }
 0x10e   : > { %1330 = vmatpush3.bf16.msra.mxu0 %v1422_v44 }
 0x10f   : > { %1331 = vmatprep.subr.bf16.mxu0 %v1495_v4 }
 0x112   : > { %1332 = vmatpush3.bf16.msra.mxu0 %v1424_v46 }
 0x113   : > { %1333 = vmatprep.subr.bf16.mxu0 %v1495_v4 }
 0x116   : > { %1334 = vmatpush3.bf16.msra.mxu0 %v1426_v48 }
 0x117   : > { %1335 = vmatprep.subr.bf16.mxu0 %v1495_v4 }
 0x11a   : > { %1336 = vmatpush3.bf16.msra.mxu0 %v1428_v50 }
 0x1d0   : > { %v679_v52 = vpop.f32.mrb[0].mxu0 }
 0x1d1   : > { %v680_v53 = vadd.f32 %v679_v52, %v596_v51  ;;  %v1299_v54 = vpop.f32.mrb[1].mxu0 }
 0x1d2   : > { %v682_v57 = vpop.f32.mrb[2].mxu0 }
 0x1d3   : > { %v685_v58 = vmax.f32 %v680_v53, 0.0  ;;  %v1300_v59 = vpop.f32.mrb[3].mxu0 }
 0x1d5   : > { %v686_v61 = vpack.c.bf16 %v685_v58, %v685_v58 }
 0x1d7   : > { %1318 = vmatmul.mubr.bf16.vlgmr.msra.gmra.mrb[8].mxu1 %v686_v61  ;;  %1338 = vmatmul.mubr.bf16.vlgmr.msra.gmra.mrb[4].mxu0 %v686_v61 }
 0x1d8   : > { %1353 = vmatpush3.bf16.msra.mxu1 %v1352_v60  ;;  %1345 = vmatprep.mubr.msk.f32.mxu1 %vm1494_vm0, %v1495_v4 }
 0x2aa   : > { %v786_v0 = vpop.f32.mrb[8].mxu1  ;;  %v893_v1 = vpop.f32.mrb[4].mxu0 }
 0x2ab   : > { %v894_v2 = vadd.f32 %v1219_v62, %v893_v1  ;;  %v1319_v3 = vpop.f32.mrb[9].mxu1  ;;  %v1339_v5 = vpop.f32.mrb[5].mxu0  ;;  %v787_v7 = vadd.f32 %v786_v0, %v703_v63 }
 0x2ac   : > { %v789_v4 = vpop.f32.mrb[10].mxu1  ;;  %v896_v6 = vpop.f32.mrb[6].mxu0 }
 0x2ad   : > { %v900_v8 = vrot.slane %v894_v2, 7  ;;  %v1320_v9 = vpop.f32.mrb[11].mxu1  ;;  %v1340_v10 = vpop.f32.mrb[7].mxu0 }
 0x2af   : > { %v903_v11 = vsel %vm902_vm6, %v787_v7, %v900_v8 }
 0x2b0   : > { %1346 = vmatmul.mubr.msk.f32.vlgmr.msra.gmra.mrb[2].mxu1 %vm446_vm1, %v903_v11  ;;  %v905_v12 = vsub.f32 %v903_v11, %v1684_v21  ;;  %904 = vst.msk [vmem:[%s416_s15] sm:$0x3] %vm521_vm5, %v903_v11 }
 0x2b2   : > { %v906_v13 = vmul.f32 %v905_v12, %v905_v12 }
 0x2b4   : > { %v907_v14 = vsel %vm521_vm5, %v906_v13, 0.0 }
 0x2b5   : > { %908 = vadd.xlane.f32.xlu0 %v907_v14 }
 0x342   : > { %v909_v15 = vpop.xlane.xlu0 %908 }
 0x343   : > { %v910_v16 = vrot.slane %v909_v15, 4 }
 0x345   : > { %v911_v17 = vadd.f32 %v910_v16, %v909_v15 }
 0x347   : > { %v912_v18 = vrot.slane %v911_v17, 2 }
 0x349   : > { %v913_v19 = vadd.f32 %v912_v18, %v911_v17 }
 0x34b   : > { %v914_v20 = vrot.slane %v913_v19, 1 }
 0x34d   : > { %v915_v22 = vadd.f32 %v914_v20, %v913_v19 }
 0x34f   : > { %1354 = vpush %v915_v22 }
 0x383   : > { %v988_v23 = vpop.f32.mrb[2].mxu1 }
 0x384   : > { %v992_v21 = vmul.f32 %v988_v23, %v988_v23  ;;  %v1347_v24 = vpop.f32.mrb[3].mxu1 }
 0x386   : > { %v994_v25 = vsel %vm993_vm7, %v992_v21, 0.0 }
 0x387   : > { %995 = vadd.xlane.f32.xlu0 %v994_v25 }
 0x388   : > { %1442 = shalt.err (!%p1439_p3)
}
 0x389   : > { %s1443_s25 = scalar_lea.hbm %s1789_s2, 32  ;;  %s1447_s0 = scalar_lea.hbm %s1841_s10, 64 }
 0x38a   : > { %p1444_p4 = scmp.ne.s32.totalorder %s1789_s2, %s1443_s25  ;;  %p1448_p9 = scmp.lt.u32.totalorder %s1789_s2, %s1841_s10 }
 0x38b   : > { %p1449_p10 = scmp.lt.u32.totalorder %s1447_s0, %s1443_s25  ;;  %p1451_p12 = scmp.lt.u32.totalorder %s1443_s25, %s1789_s2 }
 0x38c   : > { %p1445_p7 = pnand %p1444_p4, %p1601_p5 }
 0x38d   : > { %p1450_p11 = por %p1449_p10, %p1448_p9 }
 0x38e   : > { %p1446_p8 = pneg %p1445_p7 }
 0x38f   : > { %p1452_p13 = por %p1451_p12, %p1450_p11 }
 0x391   : > { %p1453_p0 = pnand %p1452_p13, %p1446_p8 }
 0x393   : > { %1456 = shalt.err (!%p1453_p0)
}
 0x394   : > { %1362 = dma.vmem_to_hbm [thread:$0]  (%p1601_p5), %s1062_s20, 32, %s1789_s2, %s1041_s28   ;;  %v1006_v26 = vpop.xlane.xlu1 %1005  ;;  %v1025_v47 = vlaneseq }
 0x395   : > { %v1007_v28 = vrot.slane %v1006_v26, 4  ;;  %s1355_s3 = spop %1354  ;;  %s441_s20 = scalar_lea.vmem %s1843_s12, %s1625_s26 }
 0x396   : > { %v1026_v48 = vand.u32 127, %v1025_v47  ;;  %v1028_v49 = vstv %s1355_s3 }
 0x397   : > { %v1008_v30 = vadd.f32 %v1007_v28, %v1006_v26 }
 0x398   : > { %v1017_v27 = vpop.xlane.xlu1 %1016  ;;  %vm1027_vm8 = vcmp.eq.s32.totalorder %v1026_v48, 0  ;;  %vm1030_vm9 = vcmp.eq.s32.totalorder %v1026_v48, 1  ;;  %vm1033_vm10 = vcmp.eq.s32.totalorder %v1026_v48, 2  ;;  %vm1036_vm11 = vcmp.eq.s32.totalorder %v1026_v48, 3 }
 0x399   : > { %v1018_v29 = vrot.slane %v1017_v27, 4  ;;  %v1009_v32 = vrot.slane %v1008_v30, 2  ;;  %v1029_v50 = vsel %vm1027_vm8, %v1028_v49, 0.0 }
 0x39b   : > { %v1019_v31 = vadd.f32 %v1018_v29, %v1017_v27  ;;  %v1010_v37 = vadd.f32 %v1009_v32, %v1008_v30 }
 0x39d   : > { %v1020_v34 = vrot.slane %v1019_v31, 2  ;;  %v1011_v41 = vrot.slane %v1010_v37, 1 }
 0x39f   : > { %v1021_v38 = vadd.f32 %v1020_v34, %v1019_v31  ;;  %v1012_v45 = vadd.f32 %v1011_v41, %v1010_v37 }
 0x3a1   : > { %v1022_v43 = vrot.slane %v1021_v38, 1 }
 0x3a3   : > { %v1023_v46 = vadd.f32 %v1022_v43, %v1021_v38 }
 0x414   : > { %v996_v33 = vpop.xlane.xlu0 %995 }
 0x415   : > { %v997_v35 = vrot.slane %v996_v33, 4 }
 0x417   : > { %v998_v36 = vadd.f32 %v997_v35, %v996_v33 }
 0x419   : > { %v999_v39 = vrot.slane %v998_v36, 2 }
 0x41b   : > { %v1000_v40 = vadd.f32 %v999_v39, %v998_v36 }
 0x41d   : > { %v1001_v42 = vrot.slane %v1000_v40, 1 }
 0x41f   : > { %v1002_v44 = vadd.f32 %v1001_v42, %v1000_v40 }
 0x421   : > { %1356 = vpush %v1002_v44 }
 0x422   : > { %1358 = vpush %v1012_v45 }
 0x423   : > { %1360 = vpush %v1023_v46 }
 0x452   : > { %s1357_s13 = spop %1356 }
 0x453   : > { %v1031_v51 = vstv %s1357_s13  ;;  %s1359_s16 = spop %1358 }
 0x454   : > { %v1032_v52 = vsel %vm1030_vm9, %v1031_v51, %v1029_v50  ;;  %v1034_v53 = vstv %s1359_s16  ;;  %s1361_s28 = spop %1360 }
 0x455   : > { %v1035_v54 = vsel %vm1033_vm10, %v1034_v53, %v1032_v52  ;;  %v1037_v55 = vstv %s1361_s28 }
 0x456   : > { %v1038_v56 = vsel %vm1036_vm11, %v1037_v55, %v1035_v54 }
 0x457   : > { %1039 = vst [vmem:[%s441_s20] sm:$0x1] %v1038_v56 }
 0x458 PF: > { %p1368_p5 = scmp.ge.s32.totalorder %s1491_s24, 2  ;;  %s1079_s29 = sand.u32 1, %s1479_s21  }
 0x459   : > { %s1080_s25 = scalar_lea.sflag [#allocation3], %s1079_s29 }
 0x45a   : > { %p1365_p1 = pnand %p1368_p5, %p1605_p6 }
 0x45c   : > { %1474 = dma.done.wait (!%p1365_p1), %s1080_s25, 32  }
 0x45d   : > { %1476 = vsyncadd (!%p1365_p1), %s1080_s25, 4294967264  ;;  %p23_p2 = scmp.ge.s32.totalorder %s1588_s27, 4   ;;  %s1854_s21 = smov %s1483_s22 }
 0x45e   : > { %s1855_s22 = smov %s1487_s23  ;;  %s1856_s23 = smov %s1599_s30 }
 0x45f   : > { %s1857_s24 = smov %s1588_s27  ;;  %25 = sbr.rel (!%p23_p2) target bundleno = 8 (0x8), region = 124 }
 0x466   :  { %1098 = vsyncpa [#allocation3], 1 }
 0x467   :  { %1100 = vsyncpa [#allocation3 + $0x1], 1 }

// kernel: forward.23
= control target key start
LH: loop header
LB: loop body
LE: loop exit
PB: predicated region body
PF: predicated region fallthrough
CT: control target
= control target key end

     0   :  { %s2280_s0 = inlined_call_operand.vmem [shape: f32[2,2,16], index: 0, kind: input, shape index: {}]   ;;  %s2281_s1 = inlined_call_operand.vmem [shape: f32[2,2,16], index: 1, kind: input, shape index: {}]   ;;  %s2282_s2 = inlined_call_operand.vmem [shape: f32[2,1,5], index: 2, kind: input, shape index: {}]   ;;  %s2283_s3 = inlined_call_operand.vmem [shape: f32[2,1,32], index: 3, kind: input, shape index: {}]   ;;  %s2284_s4 = inlined_call_operand.vmem [shape: f32[1,2], index: 4, kind: input, shape index: {}]   ;;  %s2285_s5 = inlined_call_operand.vmem [shape: f32[2,2], index: 5, kind: input, shape index: {}]   ;;  %s2286_s6 = inlined_call_operand.vmem [shape: f32[16,14], index: 6, kind: input, shape index: {}]   ;;  %s2287_s7 = inlined_call_operand.vmem [shape: f32[2,128], index: 7, kind: input, shape index: {}]   ;;  %s2288_s8 = inlined_call_operand.vmem [shape: bf16[32,128], index: 8, kind: input, shape index: {}]   ;;  %s2289_s9 = inlined_call_operand.vmem [shape: bf16[5,128], index: 9, kind: input, shape index: {}]   ;;  %s2290_s10 = inlined_call_operand.vmem [shape: f32[1,128], index: 10, kind: input, shape index: {}]   ;;  %s2291_s11 = inlined_call_operand.vmem [shape: bf16[128,128], index: 11, kind: input, shape index: {}]   ;;  %s2292_s12 = inlined_call_operand.vmem [shape: f32[1,128], index: 12, kind: input, shape index: {}]   ;;  %s2293_s13 = inlined_call_operand.vmem [shape: bf16[128,128], index: 13, kind: input, shape index: {}]   ;;  %s2294_s14 = inlined_call_operand.vmem [shape: f32[1,128], index: 14, kind: input, shape index: {}]   ;;  %s2295_s15 = inlined_call_operand.vmem [shape: bf16[128,2], index: 15, kind: input, shape index: {}]   ;;  %s2296_s16 = inlined_call_operand.vmem [shape: f32[1,2], index: 16, kind: input, shape index: {}]   ;;  %s2297_s17 = inlined_call_operand.hbm [shape: f32[2,2,16], index: 17, kind: output, shape index: {0}]   ;;  %s2298_s18 = inlined_call_operand.vmem [shape: f32[2,1,128], index: 18, kind: output, shape index: {1}]  }
   0x1   :  { %2312 = sst [smem:[#allocation19_spill]] %s2280_s0 }
   0x2   :  { %2313 = sst [smem:[#allocation20_spill]] %s2281_s1 }
   0x3   :  { %2314 = sst [smem:[#allocation21_spill]] %s2282_s2 }
   0x4   :  { %2315 = sst [smem:[#allocation22_spill]] %s2284_s4 }
   0x5   :  { %2316 = sst [smem:[#allocation23_spill]] %s2285_s5 }
   0x6   :  { %2317 = sst [smem:[#allocation24_spill]] %s2289_s9 }
   0x7   :  { %2318 = sst [smem:[#allocation25_spill]] %s2296_s16 }
   0x8   :  { %2319 = sst [smem:[#allocation26_spill]] %s2297_s17 }
   0x9   :  { %2320 = sst [smem:[#allocation27_spill]] %s2298_s18 }
   0xa   :  { %24 = vsyncpa [#allocation4], 0 }
   0xb   :  { %25 = vsyncpa [#allocation6], 0 }
   0xc   :  { %26 = vsyncpa [#allocation3], 0 }
   0xd   :  { %28 = vsyncpa [#allocation3 + $0x1], 0  ;;  %s1971_s27 = smov 0   ;;  %s1973_s28 = smov 0  }
   0xe   :  { %s1975_s29 = smov 0   ;;  %s1977_s30 = smov 0  }
   0xf LB: > { %2321 = sst [smem:[#allocation11_spill]] %s1853_s27  ;;  %s1992_s0 = sadd.s32 4294967295, %s1865_s30   ;;  %s1865_s30 = sphi %s1977_s30, %s2354_s30   ;;  %s1861_s29 = sphi %s1975_s29, %s2356_s29   ;;  %s1857_s28 = sphi %s1973_s28, %s2358_s28   ;;  %s1853_s27 = sphi %s1971_s27, %s2357_s27  }
  0x10   : > { %2322 = sst [smem:[#allocation12_spill]] %s1861_s29  ;;  %s1496_s19 = sadd.s32 4294967294, %s1865_s30  }
  0x11   : > { %2323 = sst [smem:[#allocation13_spill]] %s1865_s30  ;;  %s1996_s1 = sadd.s32 1, %s1865_s30  }
  0x12   : > { %2324 = sst [smem:[#allocation14_spill]] %s1992_s0  ;;  %s418_s20 = sadd.s32 1, %s1861_s29 }
  0x13   : > { %2325 = sst [smem:[#allocation15_spill]] %s1996_s1  ;;  %s415_s21 = ssub.s32 %s1865_s30, %s1996_s1 }
  0x14   : > { %p428_p0 = scmp.ne.s32.totalorder %s1861_s29, %s1857_s28  ;;  %p416_p1 = scmp.eq.s32.totalorder %s415_s21, 0 }
  0x15   : > { %p429_p2 = scmp.eq.s32.totalorder %s1992_s0, 1  ;;  %p434_p3 = scmp.ne.s32.totalorder %s1857_s28, %s1853_s27 }
  0x16   : > { %p435_p4 = scmp.eq.s32.totalorder %s1496_s19, 1  ;;  %p1497_p7 = scmp.ge.s32.totalorder %s1865_s30, 1 }
  0x17   : > { %s2007_s22 = scalar_select %p416_p1, %s1861_s29, %s418_s20  }
  0x18   : > { %p2009_p5 = por %p429_p2, %p428_p0  ;;  %p2013_p6 = por %p435_p4, %p434_p3 }
  0x19   : > { %2326 = sst [smem:[#allocation16_spill]] %s2007_s22  ;;  %p468_p8 = scmp.lt.s32.totalorder %s1865_s30, 3 }
  0x1a   : > { %s2327_s2 = scalar_select %p2009_p5, 1, 0 }
  0x1b   : > { %s2329_s23 = scalar_select %p2013_p6, 1, 0 }
  0x1c   : > { %2328 = sst [smem:[#allocation17_spill]] %s2327_s2  ;;  %p2302_p9 = scmp.eq.s32.totalorder %s1992_s0, 0 }
  0x1d   : > { %2330 = sst [smem:[#allocation18_spill]] %s2329_s23  ;;  %p2020_p10 = pnand %p1497_p7, %p468_p8 }
  0x1e   : > { %s2332_s4 = sld [smem:[#allocation22_spill]]  ;;  %s2333_s5 = sld [smem:[#allocation23_spill]] }
  0x1f   : > { %s2331_s24 = scalar_select %p2020_p10, 1, 0 }
  0x20   : > { %p1678_p11 = pneg %p2020_p10 }
  0x22   : > { %p2034_p12 = pnand %p2302_p9, %p1678_p11 }
  0x24   : > { %s481_s19 = sshll.u32 %s2332_s4, 4  ;;  %s492_s22 = sshll.u32 %s2333_s5, 4  ;;  %s482_s19 = int_to_ptr.vmem [resolvable:$true] %s481_s19  ;;  %s493_s22 = int_to_ptr.vmem [resolvable:$true] %s492_s22 }
  0x25   : > { %s1765_s1 = scalar_lea.vmem %s482_s19, 16  ;;  %p1767_p0 = pneg %p2034_p12 }
  0x26   : > { %p1766_p13 = scmp.ne.s32.totalorder %s482_s19, %s1765_s1  ;;  %p1773_p3 = scmp.lt.s32.totalorder %s482_s19, %s482_s19 }
  0x27   : > { %p1774_p4 = scmp.lt.s32.totalorder %s1765_s1, %s1765_s1 }
  0x28   : > { %p1768_p1 = pnand %p1767_p0, %p1766_p13 }
  0x29   : > { %p1775_p7 = por %p1774_p4, %p1773_p3 }
  0x2a   : > { %p1769_p2 = pneg %p1768_p1 }
  0x2c   : > { %p1776_p8 = pnand %p1775_p7, %p1769_p2 }
  0x2e   : > { %1779 = shalt.err (!%p1776_p8)
}
  0x2f   : > { %s1867_s25 = smov [#allocation2]   ;;  %s1780_s26 = scalar_lea.vmem %s493_s22, 32 }
  0x30   : > { %1681 = dma.vmem_to_smem (!%p2034_p12), %s482_s19, 16, %s1867_s25, [#allocation4]  }
  0x31   : > { %p1781_p11 = scmp.ne.s32.totalorder %s493_s22, %s1780_s26  ;;  %p1788_p5 = scmp.lt.s32.totalorder %s493_s22, %s493_s22 }
  0x32   : > { %p1789_p10 = scmp.lt.s32.totalorder %s1780_s26, %s1780_s26 }
  0x33   : > { %p1783_p9 = pnand %p1781_p11, %p1767_p0 }
  0x34   : > { %p1790_p13 = por %p1789_p10, %p1788_p5 }
  0x35   : > { %p1784_p6 = pneg %p1783_p9 }
  0x37   : > { %p1791_p1 = pnand %p1790_p13, %p1784_p6 }
  0x39   : > { %1794 = shalt.err (!%p1791_p1)
}
  0x3a   : > { %s1868_s20 = smov [#allocation5]   ;;  %p2335_p2 = scmp.ne.s32.totalorder %s2331_s24, 0 }
  0x3b   : > { %1684 = dma.vmem_to_smem (!%p2034_p12), %s493_s22, 32, %s1868_s20, [#allocation6]  }
  0x3c   : > { %564 = sbr.rel (%p2335_p2) target bundleno = 1573 (0x625), region = 88  ;;  %p2336_p3 = scmp.eq.s32.totalorder (!%p2335_p2), %s1992_s0, 0 }
  0x43   : > { %1840 = dma.done.wait (%p2336_p3), [#allocation4], 16   ;;  %p2337_p4 = pmov %p2336_p3 }
  0x44   : > { %p2338_p9 = pmov %p2336_p3 }
  0x45   : > { %1842 = vsyncadd (%p2337_p4), [#allocation4], 4294967280 }
  0x46   : > { %1844 = dma.done.wait (%p2338_p9), [#allocation6], 32   ;;  %p2339_p5 = pmov %p2336_p3 }
  0x48   : > { %1846 = vsyncadd (%p2339_p5), [#allocation6], 4294967264 }
  0x49   : > { %574 = sfence }
  0x4a   : > { %p635_p6 = scmp.lt.s32.totalorder %s1992_s0, 1  ;;  %s2055_s29 = sld [smem:[#allocation2]]  ;;  %v1869_v1 = vmov 0.0   ;;  %vm714_vm0 = vcmask 1041408   ;;  %vm715_vm1 = vcmask 1042432   ;;  %v1870_v2 = vmov 65535  }
  0x4b   : > { %s2340_s9 = sld [smem:[#allocation24_spill]]  ;;  %s2060_s24 = sld [smem:[#allocation2 + $0x1]]  ;;  %1580 = vmatprep.subr.bf16.mxu1 %v1869_v1  ;;  %1594 = vmatprep.subr.bf16.mxu0 %v1869_v1  ;;  %v716_v3 = vsel %vm714_vm0, 4294967295, %v1870_v2  ;;  %vm1871_vm2 = vmmov 0   ;;  %vm710_vm3 = vcmask 39936   ;;  %v1739_v8 = vld [vmem:[%s2288_s8] sm:$0xff]   ;;  %v830_v48 = vlaneseq }
  0x4c   : > { %s1508_s19 = sshll.u32 %s1992_s0, 7  ;;  %v717_v4 = vsel %vm715_vm1, %v716_v3, 0  ;;  %1582 = vmatprep.mubr.msk.bf16.mxu1 %vm1871_vm2, %v1869_v1  ;;  %1610 = vmatprep.mubr.msk.bf16.mxu0 %vm1871_vm2, %v1869_v1  ;;  %s2341_s5 = sld [smem:[#allocation19_spill]]  ;;  %v1872_v9 = vmov 1   ;;  %vm773_vm4 = vcmask 261120   ;;  %v1740_v14 = vld [vmem:[%s2288_s8 + $0x8] sm:$0xff]  }
  0x4d   : > { %s2066_s21 = scalar_select %p635_p6, %s1992_s0, 1  ;;  %1735 = vset.pattern.permute.xlu1 %v1872_v9  ;;  %v1741_v22 = vld [vmem:[%s2291_s11] sm:$0xff]   ;;  %v1873_v23 = vmov 0   ;;  %v1742_v24 = vld [vmem:[%s2291_s11 + $0x8] sm:$0xff]   ;;  %v1743_v25 = vld [vmem:[%s2291_s11 + $0x10] sm:$0xff]   ;;  %v831_v49 = vshrl.u32 %v830_v48, 7 }
  0x4e   : > { %s2068_s25 = sld [smem:[#allocation5 + %s1508_s19]]  ;;  %s657_s26 = sadd.s32 1, %s1508_s19  ;;  %1595 = vmatpush3.bf16.msra.mxu0 %v1741_v22  ;;  %v1744_v26 = vld [vmem:[%s2291_s11 + $0x18] sm:$0xff]   ;;  %v1745_v28 = vld [vmem:[%s2291_s11 + $0x20] sm:$0xff]   ;;  %v1746_v30 = vld [vmem:[%s2291_s11 + $0x28] sm:$0xff]   ;;  %vm1251_vm5 = vcmask 130048  }
  0x4f   : > { %s1505_s20 = sshll.u32 %s2066_s21, 1  ;;  %s658_s1 = sld [smem:[#allocation5 + %s657_s26]]  ;;  %1596 = vmatprep.subr.bf16.mxu0 %v1869_v1  ;;  %v1747_v31 = vld [vmem:[%s2291_s11 + $0x30] sm:$0xff]   ;;  %v1748_v32 = vld [vmem:[%s2291_s11 + $0x38] sm:$0xff]   ;;  %v1749_v33 = vld [vmem:[%s2293_s13] sm:$0xff]   ;;  %v832_v50 = vsub.s32 0, %v831_v49 }
  0x50   : > { %s2342_s30 = sld [smem:[#allocation20_spill]]  ;;  %v661_v7 = vstv %s2055_s29  ;;  %s2343_s2 = sld [smem:[#allocation21_spill]]  ;;  %v1750_v34 = vld [vmem:[%s2293_s13 + $0x8] sm:$0xff]   ;;  %v1751_v35 = vld [vmem:[%s2293_s13 + $0x10] sm:$0xff]   ;;  %v1752_v36 = vld [vmem:[%s2293_s13 + $0x18] sm:$0xff]   ;;  %v852_v57 = vsub.s32 1, %v831_v49 }
  0x51   : > { %v709_v0 = vld [vmem:[%s2340_s9] sm:$0x7]  ;;  %s648_s22 = scalar_lea.vmem %s2283_s3, %s2066_s21  ;;  %v1754_v38 = vld [vmem:[%s2293_s13 + $0x28] sm:$0xff]   ;;  %s2344_s23 = sld [smem:[#allocation25_spill]]  ;;  %vm1235_vm6 = vcmask 123904   ;;  %vm1326_vm7 = vcmask 107520  }
  0x52   : > { %v719_v5 = vand.u32 %v717_v4, %v709_v0  ;;  %s638_s9 = scalar_lea.vmem %s2341_s5, %s1505_s20  ;;  %v702_v15 = vld [vmem:[%s648_s22] sm:$0x1]  ;;  %1597 = vmatpush3.bf16.msra.mxu0 %v1742_v24  ;;  %s627_s29 = sand.u32 1, %s1857_s28  }
  0x53   : > { %v659_v6 = vld [vmem:[%s638_s9] sm:$0x3]  ;;  %v703_v21 = vpack.c.bf16 %v702_v15, %v702_v15  ;;  %1598 = vmatprep.subr.bf16.mxu0 %v1869_v1  ;;  %v1759_v15 = vld [vmem:[%s2295_s15 + $0x10] sm:$0xff]   ;;  %s2347_s22 = sld [smem:[#allocation26_spill]]  ;;  %s1347_s17 = scalar_lea.sflag [#allocation3], %s627_s29 }
  0x54   : > { %1581 = vmatpush3.bf16.msra.mxu1 %v719_v5  ;;  %v662_v12 = vsub.f32 %v659_v6, %v661_v7  ;;  %s663_s9 = smul.f32 %s2060_s24, %s2068_s25  ;;  %v1753_v37 = vld [vmem:[%s2293_s13 + $0x20] sm:$0xff]   ;;  %s1504_s24 = sshll.u32 %s627_s29, 1 }
  0x55   : > { %1586 = vmatprep.subr.bf16.mxu1 %v1869_v1  ;;  %v666_v16 = vstv %s658_s1  ;;  %v817_v51 = vld [vmem:[%s2290_s10] sm:$0x1]  ;;  %s629_s25 = scalar_lea.vmem [#allocation7], %s1504_s24  ;;  %s2346_s1 = sld [smem:[#allocation17_spill]] }
  0x56   : > { %s642_s19 = scalar_lea.vmem %s2342_s30, %s1505_s20  ;;  %s645_s0 = scalar_lea.vmem %s2343_s2, %s2066_s21  ;;  %v664_v17 = vstv %s663_s9  ;;  %1599 = vmatpush3.bf16.msra.mxu0 %v1743_v25  ;;  %v819_v52 = vld [vmem:[%s2287_s7] sm:$0x3] }
  0x57   : > { %v2093_v10 = vld [vmem:[%s642_s19] sm:$0x3]  ;;  %v665_v19 = vmul.f32 %v664_v17, %v662_v12  ;;  %1600 = vmatprep.subr.bf16.mxu0 %v1869_v1  ;;  %v833_v54 = vrot.slane %v819_v52, %v832_v50  ;;  %v853_v60 = vrot.slane %v819_v52, %v852_v57  ;;  %v1756_v12 = vld [vmem:[%s2293_s13 + $0x38] sm:$0xff]   ;;  %s2345_s20 = sld [smem:[#allocation14_spill]]  ;;  %s1363_s26 = sshll.u32 %s629_s25, 4  ;;  %s1364_s26 = int_to_ptr.vmem [resolvable:$true] %s1363_s26 }
  0x58   : > { %v701_v11 = vld [vmem:[%s645_s0] sm:$0x1]  ;;  %v667_v18 = vmul.f32 %v666_v16, %v2093_v10  ;;  %v1760_v16 = vld [vmem:[%s2295_s15 + $0x18] sm:$0xff]   ;;  %s1795_s18 = scalar_lea.vmem %s1364_s26, 32  ;;  %s1875_s16 = smov [#allocation7]  }
  0x59   : > { %v708_v13 = vpack.c.bf16 %v701_v11, %v701_v11  ;;  %v1755_v11 = vld [vmem:[%s2293_s13 + $0x30] sm:$0xff]   ;;  %v1761_v17 = vld [vmem:[%s2295_s15 + $0x20] sm:$0xff]   ;;  %p1796_p10 = scmp.ne.s32.totalorder %s1364_s26, %s1795_s18  ;;  %s1799_s27 = sshll.u32 %s1875_s16, 4  ;;  %s1800_s27 = int_to_ptr.vmem [resolvable:$false] %s1799_s27 }
  0x5a   : > { %v668_v20 = vadd.f32 %v667_v18, %v665_v19  ;;  %1601 = vmatpush3.bf16.msra.mxu0 %v1744_v26  ;;  %v1762_v18 = vld [vmem:[%s2295_s15 + $0x28] sm:$0xff]   ;;  %v1513_v19 = vld [vmem:[%s2292_s12] ss:$0 sm:$0xff]  ;;  %s1801_s30 = scalar_lea.vmem %s1800_s27, 64  ;;  %p1802_p8 = scmp.lt.s32.totalorder %s1364_s26, %s1800_s27 }
  0x5b   : > { %1583 = vmatmul.mubr.msk.bf16.vlgmr.msra.gmra.mrb[0].mxu1 %vm710_vm3, %v708_v13  ;;  %1602 = vmatprep.subr.bf16.mxu0 %v1869_v1  ;;  %v1757_v13 = vld [vmem:[%s2295_s15] sm:$0xff]   ;;  %p2348_p12 = scmp.ne.s32.totalorder %s2346_s1, 0  ;;  %p1803_p11 = scmp.lt.s32.totalorder %s1801_s30, %s1795_s18 }
  0x5c   : > { %1587 = vmatpush3.bf16.msra.mxu1 %v1739_v8  ;;  %1590 = vmatprep.mubr.msk.bf16.mxu1 %vm1871_vm2, %v1869_v1 }
  0x5d   : > { %1588 = vmatprep.subr.bf16.mxu1 %v1869_v1  ;;  %669 = vxpose.xlu0.b32.start.end [1/1] (short) (narrow) %v668_v20, 16  ;;  %s1542_s19 = sshll.u32 %s2345_s20, 5  ;;  %p1797_p0 = pnand %p1796_p10, %p2348_p12 }
  0x5e   : > { %1603 = vmatpush3.bf16.msra.mxu0 %v1745_v28  ;;  %s2237_s9 = scalar_lea.hbm %s2347_s22, %s1542_s19  ;;  %p1804_p13 = por %p1803_p11, %p1802_p8 }
  0x5f   : > { %1604 = vmatprep.subr.bf16.mxu0 %v1869_v1  ;;  %p1798_p7 = pneg %p1797_p0 }
  0x60   : > { %1589 = vmatpush3.bf16.msra.mxu1 %v1740_v14  ;;  %v1758_v14 = vld [vmem:[%s2295_s15 + $0x8] sm:$0xff]  }
  0x61   : > { %1614 = vmatprep.subr.bf16.mxu1 %v1869_v1  ;;  %p1805_p1 = pnand %p1804_p13, %p1798_p7 }
  0x62   : > { %1605 = vmatpush3.bf16.msra.mxu0 %v1746_v30  ;;  %v1764_v30 = vld [vmem:[%s2295_s15 + $0x38] sm:$0xff]  }
  0x63   : > { %1591 = vmatmul.mubr.msk.bf16.vlgmr.msra.gmra.mrb[4].mxu1 %vm773_vm4, %v703_v21  ;;  %1606 = vmatprep.subr.bf16.mxu0 %v1869_v1 }
  0x64   : > { %1630 = vmatprep.mubr.msk.bf16.mxu1 %vm1871_vm2, %v1869_v1  ;;  %1615 = vmatpush3.bf16.msra.mxu1 %v1749_v33 }
  0x65   : > { %1616 = vmatprep.subr.bf16.mxu1 %v1869_v1 }
  0x66   : > { %1607 = vmatpush3.bf16.msra.mxu0 %v1747_v31  ;;  %v1522_v31 = vld [vmem:[%s2294_s14] ss:$0 sm:$0xff] }
  0x67   : > { %1608 = vmatprep.subr.bf16.mxu0 %v1869_v1 }
  0x68   : > { %1617 = vmatpush3.bf16.msra.mxu1 %v1750_v34 }
  0x69   : > { %1618 = vmatprep.subr.bf16.mxu1 %v1869_v1 }
  0x6a   : > { %1609 = vmatpush3.bf16.msra.mxu0 %v1748_v32 }
  0x6b   : > { %1634 = vmatprep.subr.bf16.mxu0 %v1869_v1 }
  0x6c   : > { %1619 = vmatpush3.bf16.msra.mxu1 %v1751_v35 }
  0x6d   : > { %1620 = vmatprep.subr.bf16.mxu1 %v1869_v1 }
  0x70   : > { %1621 = vmatpush3.bf16.msra.mxu1 %v1752_v36 }
  0x71   : > { %1622 = vmatprep.subr.bf16.mxu1 %v1869_v1 }
  0x74   : > { %1623 = vmatpush3.bf16.msra.mxu1 %v1753_v37 }
  0x75   : > { %1624 = vmatprep.subr.bf16.mxu1 %v1869_v1 }
  0x78   : > { %1625 = vmatpush3.bf16.msra.mxu1 %v1754_v38 }
  0x79   : > { %1626 = vmatprep.subr.bf16.mxu1 %v1869_v1 }
  0x7c   : > { %1627 = vmatpush3.bf16.msra.mxu1 %v1755_v11 }
  0x7d   : > { %1628 = vmatprep.subr.bf16.mxu1 %v1869_v1 }
  0x80   : > { %1629 = vmatpush3.bf16.msra.mxu1 %v1756_v12 }
  0x86   : > { %1734 = vset.pattern.permute.xlu0 %v1873_v23 }
  0xdd   : > { %v685_v27 = vpop.trf.xlu0 }
  0xde   : > { %843 = vperm.xlu1 %1735, %v685_v27   ;;  %822 = vperm.xlu0 %1734, %v685_v27  }
  0xe1   : > { %v686_v29 = vpop.trf.xlu0 }
  0xe2   : > { %1736 = vset.pattern.permute.xlu1 %v1873_v23  ;;  %1738 = vset.pattern.permute.xlu0 %v1872_v9 }
  0xe3   : > { %827 = vperm.xlu1 %1736, %v686_v29  }
  0xe7   : > { %1737 = vset.pattern.permute.xlu1 %v1872_v9 }
  0xe8   : > { %847 = vperm.xlu1 %1737, %v686_v29   ;;  %v1763_v29 = vld [vmem:[%s2295_s15 + $0x30] sm:$0xff]  }
 0x12e   : > { %v755_v39 = vpop.f32.mrb[0].mxu1 }
 0x12f   : > { %v1584_v40 = vpop.f32.mrb[1].mxu1 }
 0x130   : > { %v758_v41 = vpop.f32.mrb[2].mxu1 }
 0x131   : > { %v1585_v42 = vpop.f32.mrb[3].mxu1  ;;  %v1250_v41 = vld [vmem:[%s2286_s6 + $0x8] sm:$0xff] }
 0x132   : > { %v1874_v42 = vmov 0.0|0.0  }
 0x133   : > { %1661 = vmatprep.subr.bf16.mxu1 %v1874_v42 }
 0x136   : > { %v811_v43 = vpop.f32.mrb[4].mxu1 }
 0x137   : > { %v812_v44 = vadd.f32 %v811_v43, %v755_v39  ;;  %v1592_v45 = vpop.f32.mrb[5].mxu1 }
 0x138   : > { %v814_v46 = vpop.f32.mrb[6].mxu1 }
 0x139   : > { %v1593_v47 = vpop.f32.mrb[7].mxu1  ;;  %v818_v53 = vadd.f32 %v817_v51, %v812_v44  ;;  %v1531_v44 = vld [vmem:[%s2344_s23] ss:$0 sm:$0xff] }
 0x13b   : > { %v839_v58 = vrot.slane %v818_v53, %v832_v50 }
 0x15d   : > { %v844_v55 = vpop.permute.xlu1 %843  ;;  %v823_v56 = vpop.permute.xlu0 %822 }
 0x15e   : > { %v834_v59 = vmul.f32 %v833_v54, %v823_v56  ;;  %v854_v0 = vmul.f32 %v853_v60, %v844_v55 }
 0x160   : > { %v840_v62 = vadd.f32 %v839_v58, %v834_v59 }
 0x162   : > { %v828_v61 = vpop.permute.xlu1 %827  ;;  %v856_v3 = vadd.f32 %v854_v0, %v840_v62 }
 0x163   : > { %v835_v63 = vmul.f32 %v833_v54, %v828_v61 }
 0x164   : > { %v858_v7 = vmax.f32 %v856_v3, 0.0 }
 0x165   : > { %v841_v4 = vadd.f32 %v839_v58, %v835_v63 }
 0x167   : > { %v848_v2 = vpop.permute.xlu1 %847 }
 0x168   : > { %v855_v5 = vmul.f32 %v853_v60, %v848_v2 }
 0x16a   : > { %v857_v6 = vadd.f32 %v855_v5, %v841_v4 }
 0x16c   : > { %v859_v8 = vmax.f32 %v857_v6, 0.0 }
 0x16e   : > { %v860_v9 = vpack.c.bf16 %v859_v8, %v858_v7 }
 0x170   : > { %1611 = vmatmul.mubr.bf16.vlgmr.msra.gmra.mrb[0].mxu0 %v860_v9 }
 0x171   : > { %1650 = vmatprep.mubr.msk.bf16.mxu0 %vm1871_vm2, %v1869_v1  ;;  %1635 = vmatpush3.bf16.msra.mxu0 %v1757_v13 }
 0x172   : > { %1636 = vmatprep.subr.bf16.mxu0 %v1869_v1 }
 0x175   : > { %1637 = vmatpush3.bf16.msra.mxu0 %v1758_v14 }
 0x176   : > { %1638 = vmatprep.subr.bf16.mxu0 %v1869_v1 }
 0x179   : > { %1639 = vmatpush3.bf16.msra.mxu0 %v1759_v15 }
 0x17a   : > { %1640 = vmatprep.subr.bf16.mxu0 %v1869_v1 }
 0x17d   : > { %1641 = vmatpush3.bf16.msra.mxu0 %v1760_v16 }
 0x17e   : > { %1642 = vmatprep.subr.bf16.mxu0 %v1869_v1 }
 0x181   : > { %1643 = vmatpush3.bf16.msra.mxu0 %v1761_v17 }
 0x182   : > { %1644 = vmatprep.subr.bf16.mxu0 %v1869_v1 }
 0x185   : > { %1645 = vmatpush3.bf16.msra.mxu0 %v1762_v18 }
 0x186   : > { %1646 = vmatprep.subr.bf16.mxu0 %v1869_v1 }
 0x189   : > { %1647 = vmatpush3.bf16.msra.mxu0 %v1763_v29 }
 0x18a   : > { %1648 = vmatprep.subr.bf16.mxu0 %v1869_v1 }
 0x18d   : > { %1649 = vmatpush3.bf16.msra.mxu0 %v1764_v30 }
 0x243   : > { %v966_v20 = vpop.f32.mrb[0].mxu0 }
 0x244   : > { %v967_v21 = vadd.f32 %v1513_v19, %v966_v20  ;;  %v1612_v22 = vpop.f32.mrb[1].mxu0 }
 0x245   : > { %v969_v23 = vpop.f32.mrb[2].mxu0 }
 0x246   : > { %v970_v24 = vadd.f32 %v1513_v19, %v969_v23  ;;  %v1613_v25 = vpop.f32.mrb[3].mxu0  ;;  %v973_v26 = vmax.f32 %v967_v21, 0.0 }
 0x248   : > { %v974_v27 = vmax.f32 %v970_v24, 0.0 }
 0x24a   : > { %v975_v28 = vpack.c.bf16 %v974_v27, %v973_v26 }
 0x24c   : > { %1631 = vmatmul.mubr.bf16.vlgmr.msra.gmra.mrb[8].mxu1 %v975_v28 }
 0x24d   : > { %1658 = vmatprep.mubr.msk.f32.mxu1 %vm1871_vm2, %v1869_v1  ;;  %v1249_v1 = vld [vmem:[%s2286_s6] sm:$0xff] }
 0x24e   : > { %v1662_v43 = vpack.c.bf16 %v1250_v41, %v1249_v1 }
 0x250   : > { %1663 = vmatpush3.bf16.msra.mxu1 %v1662_v43 }
 0x31f   : > { %v1081_v32 = vpop.f32.mrb[8].mxu1 }
 0x320   : > { %v1082_v33 = vadd.f32 %v1522_v31, %v1081_v32  ;;  %v1632_v34 = vpop.f32.mrb[9].mxu1 }
 0x321   : > { %v1084_v35 = vpop.f32.mrb[10].mxu1 }
 0x322   : > { %v1085_v36 = vadd.f32 %v1522_v31, %v1084_v35  ;;  %v1633_v37 = vpop.f32.mrb[11].mxu1  ;;  %v1088_v38 = vmax.f32 %v1082_v33, 0.0 }
 0x324   : > { %v1089_v39 = vmax.f32 %v1085_v36, 0.0 }
 0x326   : > { %v1090_v40 = vpack.c.bf16 %v1089_v39, %v1088_v38 }
 0x328   : > { %1651 = vmatmul.mubr.bf16.vlgmr.msra.gmra.mrb[4].mxu0 %v1090_v40 }
 0x3fb   : > { %v1196_v45 = vpop.f32.mrb[4].mxu0 }
 0x3fc   : > { %v1197_v46 = vadd.f32 %v1531_v44, %v1196_v45  ;;  %v1652_v47 = vpop.f32.mrb[5].mxu0 }
 0x3fd   : > { %v1199_v49 = vpop.f32.mrb[6].mxu0 }
 0x3fe   : > { %1203 = vxpose.xlu1.b32.start [1/2] (short) (narrow) %v1197_v46, 8  ;;  %v1653_v50 = vpop.f32.mrb[7].mxu0  ;;  %v1200_v51 = vadd.f32 %v1531_v44, %v1199_v49 }
 0x402   : > { %1204 = vxpose.xlu1.b32.end [2/2] (short) (narrow) %v1200_v51, 8 }
 0x47e   : > { %v1219_v52 = vpop.trf.xlu1 }
 0x47f   : > { %1659 = vmatmul.mubr.msk.f32.vlgmr.msra.gmra.mrb[12].mxu1 %vm1251_vm5, %v1219_v52  ;;  %v1237_v53 = vsub.f32 %v1219_v52, %v2093_v10  ;;  %1236 = vst.msk [vmem:[%s629_s25] sm:$0x3] %vm1235_vm6, %v1219_v52 }
 0x481   : > { %v1238_v54 = vmul.f32 %v1237_v53, %v1237_v53 }
 0x483   : > { %v1239_v55 = vsel %vm1235_vm6, %v1238_v54, 0.0 }
 0x484   : > { %1240 = vadd.xlane.f32.xlu0 %v1239_v55 }
 0x511   : > { %v1241_v56 = vpop.xlane.xlu0 %1240 }
 0x512   : > { %v1242_v57 = vrot.slane %v1241_v56, 4 }
 0x514   : > { %v1243_v58 = vadd.f32 %v1242_v57, %v1241_v56 }
 0x516   : > { %v1244_v59 = vrot.slane %v1243_v58, 2 }
 0x518   : > { %v1245_v60 = vadd.f32 %v1244_v59, %v1243_v58 }
 0x51a   : > { %v1246_v61 = vrot.slane %v1245_v60, 1 }
 0x51c   : > { %v1247_v62 = vadd.f32 %v1246_v61, %v1245_v60 }
 0x51e   : > { %1664 = vpush %v1247_v62 }
 0x552   : > { %v1321_v63 = vpop.f32.mrb[12].mxu1 }
 0x553   : > { %v1325_v0 = vmul.f32 %v1321_v63, %v1321_v63  ;;  %v1660_v10 = vpop.f32.mrb[13].mxu1 }
 0x555   : > { %v1327_v2 = vsel %vm1326_vm7, %v1325_v0, 0.0 }
 0x556   : > { %1328 = vadd.xlane.f32.xlu1 %v1327_v2 }
 0x557   : > { %1808 = shalt.err (!%p1805_p1)
}
 0x558   : > { %s1809_s0 = scalar_lea.hbm %s2237_s9, 32  ;;  %s1813_s29 = scalar_lea.hbm %s2347_s22, 64 }
 0x559   : > { %p1810_p2 = scmp.ne.s32.totalorder %s2237_s9, %s1809_s0  ;;  %p1814_p9 = scmp.lt.u32.totalorder %s2237_s9, %s2347_s22 }
 0x55a   : > { %p1815_p5 = scmp.lt.u32.totalorder %s1813_s29, %s1809_s0  ;;  %p1817_p10 = scmp.lt.u32.totalorder %s1809_s0, %s2237_s9 }
 0x55b   : > { %p1811_p3 = pnand %p1810_p2, %p2348_p12 }
 0x55c   : > { %p1816_p6 = por %p1815_p5, %p1814_p9 }
 0x55d   : > { %p1812_p4 = pneg %p1811_p3 }
 0x55e   : > { %p1818_p0 = por %p1817_p10, %p1816_p6 }
 0x560   : > { %p1819_p7 = pnand %p1818_p0, %p1812_p4 }
 0x562   : > { %1822 = shalt.err (!%p1819_p7)
}
 0x563   : > { %1676 = dma.vmem_to_hbm [thread:$0]  (%p2348_p12), %s1364_s26, 32, %s2237_s9, %s1347_s17   ;;  %v1338_v11 = vand.u32 127, %v830_v48 }
 0x564   : > { %s1665_s20 = spop %1664  ;;  %s2349_s1 = sld [smem:[#allocation27_spill]] }
 0x565   : > { %vm1339_vm8 = vcmp.eq.s32.totalorder %v1338_v11, 0  ;;  %v1340_v12 = vstv %s1665_s20  ;;  %vm1342_vm9 = vcmp.eq.s32.totalorder %v1338_v11, 1 }
 0x566   : > { %v1341_v13 = vsel %vm1339_vm8, %v1340_v12, 0.0 }
 0x56a   : > { %s651_s5 = scalar_lea.vmem %s2349_s1, %s2066_s21 }
 0x5e3   : > { %v1329_v3 = vpop.xlane.xlu1 %1328 }
 0x5e4   : > { %v1330_v4 = vrot.slane %v1329_v3, 4 }
 0x5e6   : > { %v1331_v5 = vadd.f32 %v1330_v4, %v1329_v3 }
 0x5e8   : > { %v1332_v6 = vrot.slane %v1331_v5, 2 }
 0x5ea   : > { %v1333_v7 = vadd.f32 %v1332_v6, %v1331_v5 }
 0x5ec   : > { %v1334_v8 = vrot.slane %v1333_v7, 1 }
 0x5ee   : > { %v1335_v9 = vadd.f32 %v1334_v8, %v1333_v7 }
 0x5f0   : > { %1666 = vpush %v1335_v9 }
 0x621   : > { %s1667_s18 = spop %1666 }
 0x622   : > { %v1343_v14 = vstv %s1667_s18 }
 0x623   : > { %v1344_v15 = vsel %vm1342_vm9, %v1343_v14, %v1341_v13 }
 0x624   : > { %1345 = vst [vmem:[%s651_s5] sm:$0x1] %v1344_v15 }
 0x625 PF: > { %s2350_s26 = sld [smem:[#allocation13_spill]]  ;;  %s2351_s9 = sld [smem:[#allocation11_spill]] }
 0x626   : > { %s2352_s17 = sld [smem:[#allocation18_spill]] }
 0x62b   : > { %p1693_p12 = scmp.ge.s32.totalorder %s2350_s26, 2  ;;  %s1378_s16 = sand.u32 1, %s2351_s9  }
 0x62c   : > { %p2353_p8 = scmp.ne.s32.totalorder %s2352_s17, 0  ;;  %s1379_s27 = scalar_lea.sflag [#allocation3], %s1378_s16 }
 0x62e   : > { %p1686_p11 = pnand %p1693_p12, %p2353_p8 }
 0x630   : > { %1848 = dma.done.wait (!%p1686_p11), %s1379_s27, 32  }
 0x631   : > { %1850 = vsyncadd (!%p1686_p11), %s1379_s27, 4294967264  ;;  %s2354_s30 = sld [smem:[#allocation15_spill]]  ;;  %s2355_s0 = sld [smem:[#allocation12_spill]] }
 0x632   : > { %s2356_s29 = sld [smem:[#allocation16_spill]]  ;;  %s2357_s27 = smov %s1857_s28 }
 0x637   : > { %p31_p13 = scmp.ge.s32.totalorder %s2354_s30, 4   ;;  %s2358_s28 = smov %s2355_s0 }
 0x639   :  { %33 = sbr.rel (!%p31_p13) target bundleno = 15 (0xf), region = 153 }
 0x640   :  { %1390 = vsyncpa [#allocation3], 1 }
 0x641   :  { %1392 = vsyncpa [#allocation3 + $0x1], 1 }
 0x642   :  { %1393 = vsyncpa [#allocation4], 1 }
 0x643   :  { %1395 = vsyncpa [#allocation4 + $0x1], 1 }
 0x644   :  { %1396 = vsyncpa [#allocation6], 1 }

</bundles_post_ra>
